<compile_context>
chip_gen: v5e
topology: v5e:2x2
jax: 0.10.0
libtpu: 0.0.40
codegen_flags: <defaults>
</compile_context>

<pallas_src>
import functools
import math

import jax
import jax.numpy as jnp
from jax.experimental import pallas as pl
from jax.experimental.pallas import tpu as pltpu

EPS = 1e-5


def _layernorm_slab(v, w, b):
    """Per-batch-element LayerNorm over the full (S, D) slab — matches nn.LayerNorm((S, D))."""
    # Two single-axis means (equal inner counts) == full (S, D) mean; keeps reductions simple.
    mu = jnp.mean(jnp.mean(v, axis=2, keepdims=True), axis=1, keepdims=True)
    d = v - mu
    var = jnp.mean(jnp.mean(d * d, axis=2, keepdims=True), axis=1, keepdims=True)
    return d * jax.lax.rsqrt(var + EPS) * w + b


def _transformer_block_kernel(
    x_ref,          # (Bb, S, D)   f32
    ln1w_ref,       # (S, D)       f32
    ln1b_ref,       # (S, D)       f32
    win_ref,        # (D, 3D)      bf16  (pre-transposed in_proj_weight)
    bin_ref,        # (1, 3D)      f32
    wo_ref,         # (H, dh, D)   bf16  (out_proj.weight.T split per head)
    bo_ref,         # (1, D)       f32
    ln2w_ref,       # (S, D)       f32
    ln2b_ref,       # (S, D)       f32
    w1_ref,         # (D, 4D)      bf16  (pre-transposed mlp_1.weight)
    b1_ref,         # (1, 4D)      f32
    w2_ref,         # (4D, D)      bf16  (pre-transposed mlp_2.weight)
    b2_ref,         # (1, D)       f32
    out_ref,        # (Bb, S, D)   f32
    *,
    n_heads: int,
):
    xb = x_ref[...]                               # (Bb, S, D) f32
    Bb, S, D = xb.shape
    dh = D // n_heads
    M = Bb * S
    scale = 1.0 / math.sqrt(dh)

    # ---- LayerNorm 1 (per batch element, over the whole (S, D) slab) ----
    x1 = _layernorm_slab(xb, ln1w_ref[...], ln1b_ref[...])

    # ---- QKV projection with batch folded into the matmul M dimension ----
    x1f = x1.reshape(M, D).astype(jnp.bfloat16)
    qkv = jnp.dot(x1f, win_ref[...], preferred_element_type=jnp.float32) + bin_ref[...]
    qkvb = qkv.astype(jnp.bfloat16)               # single bf16 cast before head split

    def split_heads(t):                           # (M, D) slice -> (Bb*H, S, dh)
        return (t.reshape(Bb, S, n_heads, dh)
                 .transpose(0, 2, 1, 3)
                 .reshape(Bb * n_heads, S, dh))

    qb = split_heads(qkvb[:, 0 * D:1 * D])
    kb = split_heads(qkvb[:, 1 * D:2 * D])
    vb = split_heads(qkvb[:, 2 * D:3 * D])

    # ---- Attention (heads and batch collapsed into one leading batch axis g = b*H + h) ----
    s = jnp.einsum("gqd,gkd->gqk", qb, kb,
                   preferred_element_type=jnp.float32) * scale       # (Bb*H, S, S) f32
    s = s - jnp.max(s, axis=-1, keepdims=True)
    p = jnp.exp(s)
    p = p * pl.reciprocal(jnp.sum(p, axis=-1, keepdims=True), approx=True)

    ctx = jnp.einsum("gqk,gkd->gqd", p.astype(jnp.bfloat16), vb,
                     preferred_element_type=jnp.float32)             # (Bb*H, S, dh) f32
    ctx4 = ctx.reshape(Bb, n_heads, S, dh)

    # ---- Head merge as MXU accumulation over per-head out-proj slabs (no transpose) ----
    acc = None
    for h in range(n_heads):
        c_h = ctx4[:, h].reshape(M, dh).astype(jnp.bfloat16)         # (M, dh)
        part = jnp.dot(c_h, wo_ref[h], preferred_element_type=jnp.float32)
        acc = part if acc is None else acc + part
    attn = acc + bo_ref[...]                                         # (M, D)

    x1r = attn.reshape(Bb, S, D) + xb                                # residual 1

    # ---- LayerNorm 2 ----
    x2 = _layernorm_slab(x1r, ln2w_ref[...], ln2b_ref[...])

    # ---- PositionwiseFFN: Linear -> sigmoid(x)*x -> (dropout = id) -> Linear ----
    x2f = x2.reshape(M, D).astype(jnp.bfloat16)
    h1 = jnp.dot(x2f, w1_ref[...], preferred_element_type=jnp.float32) + b1_ref[...]
    h1 = jax.nn.sigmoid(h1) * h1
    y = jnp.dot(h1.astype(jnp.bfloat16), w2_ref[...],
                preferred_element_type=jnp.float32) + b2_ref[...]

    out_ref[...] = (y.reshape(Bb, S, D) + x1r).astype(out_ref.dtype)  # residual 2


def prepare_params(params, *, n_heads):
    """One-time weight prep (hoisted out of the per-call wrapper): transpose, bf16 cast,
    and per-head reshape of the out-projection."""
    (ln1w, ln1b, w_in, b_in, w_o, b_o, ln2w, ln2b, w1, b1, w2, b2) = params
    D = w_o.shape[0]
    dh = D // n_heads
    w_in_t = jnp.asarray(w_in.T, jnp.bfloat16)                          # (D, 3D)
    wo_hd = jnp.asarray(w_o.T.reshape(n_heads, dh, D), jnp.bfloat16)    # (H, dh, D)
    w1_t = jnp.asarray(w1.T, jnp.bfloat16)                              # (D, 4D)
    w2_t = jnp.asarray(w2.T, jnp.bfloat16)                              # (4D, D)
    return (ln1w, ln1b, w_in_t, b_in, wo_hd, b_o, ln2w, ln2b, w1_t, b1, w2_t, b2)


def _pick_block_batch(B, S):
    """Batch elements per grid step: fill ~256 MXU result rows, but keep >= 2 grid steps
    (megacore on v7x) when the batch allows it."""
    bb = max(1, min(B, max(1, 256 // max(S, 1))))
    if B >= 2 and B // bb < 2:
        bb = max(1, B // 2)
    while B % bb:                         # require clean division (no padded batch blocks)
        bb -= 1
    return bb


def transformer_block(x, prepped_params, *, n_heads):
    (ln1w, ln1b, w_in_t, b_in, wo_hd, b_o, ln2w, ln2b, w1_t, b1, w2_t, b2) = prepped_params
    B, S, D = x.shape
    assert D % n_heads == 0, "h_dim must be divisible by n_heads"
    bb = _pick_block_batch(B, S)
    M = bb * S

    full = lambda shp: pl.BlockSpec(shp, lambda i: (0,) * len(shp))

    # ---- VMEM budget (generation-aware cap) ----
    nbytes = lambda a: a.size * a.dtype.itemsize
    weight_bytes = sum(nbytes(a) for a in prepped_params)
    act_bytes = (
        2 * 2 * M * D * 4                       # x / out blocks, double-buffered
        + 8 * M * D * 4                         # x1, x1r, x2, attn, ctx, temps (f32)
        + M * 3 * D * (4 + 2)                   # qkv f32 + bf16
        + 3 * M * D * 2                         # q/k/v bf16 head-split copies
        + bb * n_heads * S * S * (4 + 4 + 2)    # scores f32 + probs f32 + probs bf16
        + M * 4 * D * (2 * 4 + 2)               # FFN hidden f32 + bf16
    )
    est = int(1.5 * (2 * weight_bytes + act_bytes)) + (4 << 20)
    try:
        cap = int(pltpu.get_tpu_info().vmem_capacity_bytes)   # v7x: 64 MiB, v5e/v6e: 128 MiB
    except Exception:
        cap = 64 << 20                                        # conservative fallback
    vmem_limit = min(max(est, 32 << 20), cap - (16 << 20))

    kernel = functools.partial(_transformer_block_kernel, n_heads=n_heads)
    return pl.pallas_call(
        kernel,
        out_shape=jax.ShapeDtypeStruct((B, S, D), jnp.float32),
        grid_spec=pltpu.PrefetchScalarGridSpec(
            num_scalar_prefetch=0,
            grid=(B // bb,),
            in_specs=[
                pl.BlockSpec((bb, S, D), lambda i: (i, 0, 0)),      # x
                full((S, D)), full((S, D)),                         # ln1 w/b
                full((D, 3 * D)), full((1, 3 * D)),                 # in_proj w/b
                full((n_heads, D // n_heads, D)), full((1, D)),     # out_proj w (per head) / b
                full((S, D)), full((S, D)),                         # ln2 w/b
                full((D, 4 * D)), full((1, 4 * D)),                 # mlp_1 w/b
                full((4 * D, D)), full((1, D)),                     # mlp_2 w/b
            ],
            out_specs=pl.BlockSpec((bb, S, D), lambda i: (i, 0, 0)),
        ),
        compiler_params=pltpu.CompilerParams(
            dimension_semantics=("parallel",),
            vmem_limit_bytes=vmem_limit,
        ),
    )(x, ln1w, ln1b, w_in_t, b_in, wo_hd, b_o, ln2w, ln2b, w1_t, b1, w2_t, b2)


def _reference(x, params, n_heads):
    """Pure-JAX f32 reference mirroring the PyTorch forward (eval mode)."""
    (ln1w, ln1b, w_in, b_in, w_o, b_o, ln2w, ln2b, w1, b1, w2, b2) = params
    B, S, D = x.shape
    dh = D // n_heads

    def ln(v, w, b):
        mu = jnp.mean(v, axis=(1, 2), keepdims=True)
        var = jnp.mean((v - mu) ** 2, axis=(1, 2), keepdims=True)
        return (v - mu) / jnp.sqrt(var + EPS) * w + b

    x1 = ln(x, ln1w, ln1b)
    qkv = jnp.einsum("bsd,ed->bse", x1, w_in) + b_in[0]
    q, k, v = jnp.split(qkv, 3, axis=-1)
    q = q.reshape(B, S, n_heads, dh).transpose(0, 2, 1, 3)
    k = k.reshape(B, S, n_heads, dh).transpose(0, 2, 1, 3)
    v = v.reshape(B, S, n_heads, dh).transpose(0, 2, 1, 3)
    s = jnp.einsum("bhqd,bhkd->bhqk", q, k) / math.sqrt(dh)
    p = jax.nn.softmax(s, axis=-1)
    ao = jnp.einsum("bhqk,bhkd->bhqd", p, v).transpose(0, 2, 1, 3).reshape(B, S, D)
    attn = jnp.einsum("bsd,ed->bse", ao, w_o) + b_o[0]
    x1r = attn + x
    x2 = ln(x1r, ln2w, ln2b)
    h1 = jnp.einsum("bsd,ed->bse", x2, w1) + b1[0]
    h1 = jax.nn.sigmoid(h1) * h1
    y = jnp.einsum("bse,de->bsd", h1, w2) + b2[0]
    return y + x1r


if __name__ == "__main__":
    # Small, lane-dense shapes: D multiple of 128, S multiple of 8.
    B, S, H, D = 2, 8, 2, 128

    key = jax.random.PRNGKey(0)
    ks = jax.random.split(key, 9)
    scale = 0.02
    ln1w = jnp.ones((S, D), jnp.float32)
    ln1b = jnp.zeros((S, D), jnp.float32)
    ln2w = jnp.ones((S, D), jnp.float32)
    ln2b = jnp.zeros((S, D), jnp.float32)
    w_in = scale * jax.random.normal(ks[0], (3 * D, D), jnp.float32)
    b_in = scale * jax.random.normal(ks[1], (1, 3 * D), jnp.float32)
    w_o = scale * jax.random.normal(ks[2], (D, D), jnp.float32)
    b_o = scale * jax.random.normal(ks[3], (1, D), jnp.float32)
    w1 = scale * jax.random.normal(ks[4], (4 * D, D), jnp.float32)
    b1 = scale * jax.random.normal(ks[5], (1, 4 * D), jnp.float32)
    w2 = scale * jax.random.normal(ks[6], (D, 4 * D), jnp.float32)
    b2 = scale * jax.random.normal(ks[7], (1, D), jnp.float32)
    params = (ln1w, ln1b, w_in, b_in, w_o, b_o, ln2w, ln2b, w1, b1, w2, b2)

    x = jax.random.normal(ks[8], (B, S, D), jnp.float32)

    # Weight prep hoisted out of the per-call path (done once).
    prepped = prepare_params(params, n_heads=H)

    fwd = jax.jit(functools.partial(transformer_block, n_heads=H))
    out = jax.block_until_ready(fwd(x, prepped))

    ref = _reference(x, params, H)
    # bf16 matmul inputs + approx softmax reciprocal -> looser tolerance than pure f32.
    assert jnp.allclose(out, ref, atol=2e-2, rtol=2e-2), (
        "mismatch vs reference, max abs err = "
        f"{float(jnp.max(jnp.abs(out - ref)))}")

    print("KERNEL_OK")
</pallas_src>

<mosaic_0001>
module attributes {stable_mosaic.version = 11 : i64} {
  func.func @_transformer_block_kernel(%arg0: i32, %arg1: memref<1x8x128xf32, #tpu.memory_space<vmem>>, %arg2: memref<8x128xf32, #tpu.memory_space<vmem>>, %arg3: memref<8x128xf32, #tpu.memory_space<vmem>>, %arg4: memref<128x384xbf16, #tpu.memory_space<vmem>>, %arg5: memref<1x384xf32, #tpu.memory_space<vmem>>, %arg6: memref<2x64x128xbf16, #tpu.memory_space<vmem>>, %arg7: memref<1x128xf32, #tpu.memory_space<vmem>>, %arg8: memref<8x128xf32, #tpu.memory_space<vmem>>, %arg9: memref<8x128xf32, #tpu.memory_space<vmem>>, %arg10: memref<128x512xbf16, #tpu.memory_space<vmem>>, %arg11: memref<1x512xf32, #tpu.memory_space<vmem>>, %arg12: memref<512x128xbf16, #tpu.memory_space<vmem>>, %arg13: memref<1x128xf32, #tpu.memory_space<vmem>>, %arg14: memref<1x8x128xf32, #tpu.memory_space<vmem>>) attributes {dimension_semantics = [#tpu.dimension_semantics<parallel>], iteration_bounds = array<i64: 2>, scalar_prefetch = 0 : i64, scratch_operands = 0 : i64, tpu.core_type = #tpu.core_type<tc>, window_params = [{transform_indices = @transform_0, window_bounds = array<i64: 1, 8, 128>}, {pipeline_mode = #tpu.pipeline_mode<synchronous>, transform_indices = @transform_1, window_bounds = array<i64: 8, 128>}, {pipeline_mode = #tpu.pipeline_mode<synchronous>, transform_indices = @transform_2, window_bounds = array<i64: 8, 128>}, {pipeline_mode = #tpu.pipeline_mode<synchronous>, transform_indices = @transform_3, window_bounds = array<i64: 128, 384>}, {pipeline_mode = #tpu.pipeline_mode<synchronous>, transform_indices = @transform_4, window_bounds = array<i64: 1, 384>}, {pipeline_mode = #tpu.pipeline_mode<synchronous>, transform_indices = @transform_5, window_bounds = array<i64: 2, 64, 128>}, {pipeline_mode = #tpu.pipeline_mode<synchronous>, transform_indices = @transform_6, window_bounds = array<i64: 1, 128>}, {pipeline_mode = #tpu.pipeline_mode<synchronous>, transform_indices = @transform_7, window_bounds = array<i64: 8, 128>}, {pipeline_mode = #tpu.pipeline_mode<synchronous>, transform_indices = @transform_8, window_bounds = array<i64: 8, 128>}, {pipeline_mode = #tpu.pipeline_mode<synchronous>, transform_indices = @transform_9, window_bounds = array<i64: 128, 512>}, {pipeline_mode = #tpu.pipeline_mode<synchronous>, transform_indices = @transform_10, window_bounds = array<i64: 1, 512>}, {pipeline_mode = #tpu.pipeline_mode<synchronous>, transform_indices = @transform_11, window_bounds = array<i64: 512, 128>}, {pipeline_mode = #tpu.pipeline_mode<synchronous>, transform_indices = @transform_12, window_bounds = array<i64: 1, 128>}, {transform_indices = @transform_13, window_bounds = array<i64: 1, 8, 128>}]} {
    %c0 = arith.constant 0 : index
    %c0_0 = arith.constant 0 : index
    %c0_1 = arith.constant 0 : index
    %0 = vector.load %arg1[%c0, %c0_0, %c0_1] : memref<1x8x128xf32, #tpu.memory_space<vmem>>, vector<1x8x128xf32>
    %c0_2 = arith.constant 0 : index
    %c0_3 = arith.constant 0 : index
    %1 = vector.load %arg2[%c0_2, %c0_3] : memref<8x128xf32, #tpu.memory_space<vmem>>, vector<8x128xf32>
    %c0_4 = arith.constant 0 : index
    %c0_5 = arith.constant 0 : index
    %2 = vector.load %arg3[%c0_4, %c0_5] : memref<8x128xf32, #tpu.memory_space<vmem>>, vector<8x128xf32>
    %cst = arith.constant dense<0.000000e+00> : vector<1x8xf32>
    %3 = vector.multi_reduction <add>, %0, %cst [2] : vector<1x8x128xf32> to vector<1x8xf32>
    %4 = vector.shape_cast %3 : vector<1x8xf32> to vector<1x8x1xf32>
    %cst_6 = arith.constant 1.280000e+02 : f32
    %5 = vector.broadcast %cst_6 : f32 to vector<1x8x1xf32>
    %6 = arith.divf %4, %5 : vector<1x8x1xf32>
    %cst_7 = arith.constant dense<0.000000e+00> : vector<1x1xf32>
    %7 = vector.multi_reduction <add>, %6, %cst_7 [1] : vector<1x8x1xf32> to vector<1x1xf32>
    %8 = vector.shape_cast %7 : vector<1x1xf32> to vector<1x1x1xf32>
    %cst_8 = arith.constant 8.000000e+00 : f32
    %9 = vector.broadcast %cst_8 : f32 to vector<1x1x1xf32>
    %10 = arith.divf %8, %9 : vector<1x1x1xf32>
    %11 = vector.broadcast %10 : vector<1x1x1xf32> to vector<1x8x128xf32>
    %12 = arith.subf %0, %11 : vector<1x8x128xf32>
    %13 = arith.mulf %12, %12 : vector<1x8x128xf32>
    %cst_9 = arith.constant dense<0.000000e+00> : vector<1x8xf32>
    %14 = vector.multi_reduction <add>, %13, %cst_9 [2] : vector<1x8x128xf32> to vector<1x8xf32>
    %15 = vector.shape_cast %14 : vector<1x8xf32> to vector<1x8x1xf32>
    %cst_10 = arith.constant 1.280000e+02 : f32
    %16 = vector.broadcast %cst_10 : f32 to vector<1x8x1xf32>
    %17 = arith.divf %15, %16 : vector<1x8x1xf32>
    %cst_11 = arith.constant dense<0.000000e+00> : vector<1x1xf32>
    %18 = vector.multi_reduction <add>, %17, %cst_11 [1] : vector<1x8x1xf32> to vector<1x1xf32>
    %19 = vector.shape_cast %18 : vector<1x1xf32> to vector<1x1x1xf32>
    %cst_12 = arith.constant 8.000000e+00 : f32
    %20 = vector.broadcast %cst_12 : f32 to vector<1x1x1xf32>
    %21 = arith.divf %19, %20 : vector<1x1x1xf32>
    %cst_13 = arith.constant 9.99999974E-6 : f32
    %22 = vector.broadcast %cst_13 : f32 to vector<1x1x1xf32>
    %23 = arith.addf %21, %22 : vector<1x1x1xf32>
    %24 = math.rsqrt %23 : vector<1x1x1xf32>
    %25 = vector.broadcast %24 : vector<1x1x1xf32> to vector<1x8x128xf32>
    %26 = arith.mulf %12, %25 : vector<1x8x128xf32>
    %27 = vector.shape_cast %1 : vector<8x128xf32> to vector<1x8x128xf32>
    %28 = arith.mulf %26, %27 : vector<1x8x128xf32>
    %29 = vector.shape_cast %2 : vector<8x128xf32> to vector<1x8x128xf32>
    %30 = arith.addf %28, %29 : vector<1x8x128xf32>
    %31 = vector.shape_cast %30 : vector<1x8x128xf32> to vector<8x128xf32>
    %32 = arith.truncf %31 : vector<8x128xf32> to vector<8x128xbf16>
    %c0_14 = arith.constant 0 : index
    %c0_15 = arith.constant 0 : index
    %33 = vector.load %arg4[%c0_14, %c0_15] : memref<128x384xbf16, #tpu.memory_space<vmem>>, vector<128x384xbf16>
    %cst_16 = arith.constant dense<0.000000e+00> : vector<8x384xf32>
    %34 = tpu.matmul %32, %33, %cst_16 {dimension_numbers = #tpu.dot_dimension_numbers<[1], [0], [0], [1], [0, 0, 1, 1], [], []>} : vector<8x128xbf16>, vector<128x384xbf16>, vector<8x384xf32> -> vector<8x384xf32>
    %c0_17 = arith.constant 0 : index
    %c0_18 = arith.constant 0 : index
    %35 = vector.load %arg5[%c0_17, %c0_18] : memref<1x384xf32, #tpu.memory_space<vmem>>, vector<1x384xf32>
    %36 = vector.broadcast %35 : vector<1x384xf32> to vector<8x384xf32>
    %37 = arith.addf %34, %36 : vector<8x384xf32>
    %38 = arith.truncf %37 : vector<8x384xf32> to vector<8x384xbf16>
    %39 = vector.extract_strided_slice %38 {offsets = [0, 0], sizes = [8, 128], strides = [1, 1]} : vector<8x384xbf16> to vector<8x128xbf16>
    %40 = vector.shape_cast %39 : vector<8x128xbf16> to vector<1x8x2x64xbf16>
    %41 = tpu.transpose %40, [0, 2, 1, 3] : vector<1x8x2x64xbf16> -> vector<1x2x8x64xbf16>
    %42 = vector.shape_cast %41 : vector<1x2x8x64xbf16> to vector<2x8x64xbf16>
    %43 = vector.extract_strided_slice %38 {offsets = [0, 128], sizes = [8, 128], strides = [1, 1]} : vector<8x384xbf16> to vector<8x128xbf16>
    %44 = vector.shape_cast %43 : vector<8x128xbf16> to vector<1x8x2x64xbf16>
    %45 = tpu.transpose %44, [0, 2, 1, 3] : vector<1x8x2x64xbf16> -> vector<1x2x8x64xbf16>
    %46 = vector.shape_cast %45 : vector<1x2x8x64xbf16> to vector<2x8x64xbf16>
    %47 = vector.extract_strided_slice %38 {offsets = [0, 256], sizes = [8, 128], strides = [1, 1]} : vector<8x384xbf16> to vector<8x128xbf16>
    %48 = vector.shape_cast %47 : vector<8x128xbf16> to vector<1x8x2x64xbf16>
    %49 = tpu.transpose %48, [0, 2, 1, 3] : vector<1x8x2x64xbf16> -> vector<1x2x8x64xbf16>
    %50 = vector.shape_cast %49 : vector<1x2x8x64xbf16> to vector<2x8x64xbf16>
    "tpu.trace_start"() <{level = 10 : i32, message = "gqd,gkd->gqk"}> : () -> ()
    %cst_19 = arith.constant dense<0.000000e+00> : vector<2x8x8xf32>
    %51 = tpu.matmul %42, %46, %cst_19 {dimension_numbers = #tpu.dot_dimension_numbers<[2], [2], [1], [1], [0, 0, 0, 1, 1, 1], [0], [0]>} : vector<2x8x64xbf16>, vector<2x8x64xbf16>, vector<2x8x8xf32> -> vector<2x8x8xf32>
    "tpu.trace_stop"() : () -> ()
    %cst_20 = arith.constant 1.250000e-01 : f32
    %52 = vector.broadcast %cst_20 : f32 to vector<2x8x8xf32>
    %53 = arith.mulf %51, %52 : vector<2x8x8xf32>
    %cst_21 = arith.constant dense<0xFF800000> : vector<2x8xf32>
    %54 = vector.multi_reduction <maximumf>, %53, %cst_21 [2] : vector<2x8x8xf32> to vector<2x8xf32>
    %55 = vector.shape_cast %54 : vector<2x8xf32> to vector<2x8x1xf32>
    %56 = vector.broadcast %55 : vector<2x8x1xf32> to vector<2x8x8xf32>
    %57 = arith.subf %53, %56 : vector<2x8x8xf32>
    %58 = math.exp %57 : vector<2x8x8xf32>
    %cst_22 = arith.constant dense<0.000000e+00> : vector<2x8xf32>
    %59 = vector.multi_reduction <add>, %58, %cst_22 [2] : vector<2x8x8xf32> to vector<2x8xf32>
    %60 = vector.shape_cast %59 : vector<2x8xf32> to vector<2x8x1xf32>
    %61 = tpu.reciprocal %60 {approx = true} : vector<2x8x1xf32> -> vector<2x8x1xf32>
    %62 = vector.broadcast %61 : vector<2x8x1xf32> to vector<2x8x8xf32>
    %63 = arith.mulf %58, %62 : vector<2x8x8xf32>
    %64 = arith.truncf %63 : vector<2x8x8xf32> to vector<2x8x8xbf16>
    "tpu.trace_start"() <{level = 10 : i32, message = "gqk,gkd->gqd"}> : () -> ()
    %cst_23 = arith.constant dense<0.000000e+00> : vector<2x8x64xf32>
    %65 = tpu.matmul %64, %50, %cst_23 {dimension_numbers = #tpu.dot_dimension_numbers<[2], [1], [1], [2], [0, 0, 0, 1, 1, 2], [0], [0]>} : vector<2x8x8xbf16>, vector<2x8x64xbf16>, vector<2x8x64xf32> -> vector<2x8x64xf32>
    "tpu.trace_stop"() : () -> ()
    %66 = vector.shape_cast %65 : vector<2x8x64xf32> to vector<1x2x8x64xf32>
    %67 = vector.extract_strided_slice %66 {offsets = [0, 0, 0, 0], sizes = [1, 1, 8, 64], strides = [1, 1, 1, 1]} : vector<1x2x8x64xf32> to vector<1x1x8x64xf32>
    %68 = vector.shape_cast %67 : vector<1x1x8x64xf32> to vector<1x8x64xf32>
    %69 = vector.shape_cast %68 : vector<1x8x64xf32> to vector<8x64xf32>
    %70 = arith.truncf %69 : vector<8x64xf32> to vector<8x64xbf16>
    %c0_24 = arith.constant 0 : index
    %c0_25 = arith.constant 0 : index
    %c0_26 = arith.constant 0 : index
    %71 = vector.load %arg6[%c0_24, %c0_25, %c0_26] : memref<2x64x128xbf16, #tpu.memory_space<vmem>>, vector<1x64x128xbf16>
    %72 = vector.shape_cast %71 : vector<1x64x128xbf16> to vector<64x128xbf16>
    %cst_27 = arith.constant dense<0.000000e+00> : vector<8x128xf32>
    %73 = tpu.matmul %70, %72, %cst_27 {dimension_numbers = #tpu.dot_dimension_numbers<[1], [0], [0], [1], [0, 0, 1, 1], [], []>} : vector<8x64xbf16>, vector<64x128xbf16>, vector<8x128xf32> -> vector<8x128xf32>
    %74 = vector.extract_strided_slice %66 {offsets = [0, 1, 0, 0], sizes = [1, 1, 8, 64], strides = [1, 1, 1, 1]} : vector<1x2x8x64xf32> to vector<1x1x8x64xf32>
    %75 = vector.shape_cast %74 : vector<1x1x8x64xf32> to vector<1x8x64xf32>
    %76 = vector.shape_cast %75 : vector<1x8x64xf32> to vector<8x64xf32>
    %77 = arith.truncf %76 : vector<8x64xf32> to vector<8x64xbf16>
    %c1 = arith.constant 1 : index
    %c0_28 = arith.constant 0 : index
    %c0_29 = arith.constant 0 : index
    %78 = vector.load %arg6[%c1, %c0_28, %c0_29] : memref<2x64x128xbf16, #tpu.memory_space<vmem>>, vector<1x64x128xbf16>
    %79 = vector.shape_cast %78 : vector<1x64x128xbf16> to vector<64x128xbf16>
    %cst_30 = arith.constant dense<0.000000e+00> : vector<8x128xf32>
    %80 = tpu.matmul %77, %79, %cst_30 {dimension_numbers = #tpu.dot_dimension_numbers<[1], [0], [0], [1], [0, 0, 1, 1], [], []>} : vector<8x64xbf16>, vector<64x128xbf16>, vector<8x128xf32> -> vector<8x128xf32>
    %81 = arith.addf %73, %80 : vector<8x128xf32>
    %c0_31 = arith.constant 0 : index
    %c0_32 = arith.constant 0 : index
    %82 = vector.load %arg7[%c0_31, %c0_32] : memref<1x128xf32, #tpu.memory_space<vmem>>, vector<1x128xf32>
    %83 = vector.broadcast %82 : vector<1x128xf32> to vector<8x128xf32>
    %84 = arith.addf %81, %83 : vector<8x128xf32>
    %85 = vector.shape_cast %84 : vector<8x128xf32> to vector<1x8x128xf32>
    %86 = arith.addf %85, %0 : vector<1x8x128xf32>
    %c0_33 = arith.constant 0 : index
    %c0_34 = arith.constant 0 : index
    %87 = vector.load %arg8[%c0_33, %c0_34] : memref<8x128xf32, #tpu.memory_space<vmem>>, vector<8x128xf32>
    %c0_35 = arith.constant 0 : index
    %c0_36 = arith.constant 0 : index
    %88 = vector.load %arg9[%c0_35, %c0_36] : memref<8x128xf32, #tpu.memory_space<vmem>>, vector<8x128xf32>
    %cst_37 = arith.constant dense<0.000000e+00> : vector<1x8xf32>
    %89 = vector.multi_reduction <add>, %86, %cst_37 [2] : vector<1x8x128xf32> to vector<1x8xf32>
    %90 = vector.shape_cast %89 : vector<1x8xf32> to vector<1x8x1xf32>
    %cst_38 = arith.constant 1.280000e+02 : f32
    %91 = vector.broadcast %cst_38 : f32 to vector<1x8x1xf32>
    %92 = arith.divf %90, %91 : vector<1x8x1xf32>
    %cst_39 = arith.constant dense<0.000000e+00> : vector<1x1xf32>
    %93 = vector.multi_reduction <add>, %92, %cst_39 [1] : vector<1x8x1xf32> to vector<1x1xf32>
    %94 = vector.shape_cast %93 : vector<1x1xf32> to vector<1x1x1xf32>
    %cst_40 = arith.constant 8.000000e+00 : f32
    %95 = vector.broadcast %cst_40 : f32 to vector<1x1x1xf32>
    %96 = arith.divf %94, %95 : vector<1x1x1xf32>
    %97 = vector.broadcast %96 : vector<1x1x1xf32> to vector<1x8x128xf32>
    %98 = arith.subf %86, %97 : vector<1x8x128xf32>
    %99 = arith.mulf %98, %98 : vector<1x8x128xf32>
    %cst_41 = arith.constant dense<0.000000e+00> : vector<1x8xf32>
    %100 = vector.multi_reduction <add>, %99, %cst_41 [2] : vector<1x8x128xf32> to vector<1x8xf32>
    %101 = vector.shape_cast %100 : vector<1x8xf32> to vector<1x8x1xf32>
    %cst_42 = arith.constant 1.280000e+02 : f32
    %102 = vector.broadcast %cst_42 : f32 to vector<1x8x1xf32>
    %103 = arith.divf %101, %102 : vector<1x8x1xf32>
    %cst_43 = arith.constant dense<0.000000e+00> : vector<1x1xf32>
    %104 = vector.multi_reduction <add>, %103, %cst_43 [1] : vector<1x8x1xf32> to vector<1x1xf32>
    %105 = vector.shape_cast %104 : vector<1x1xf32> to vector<1x1x1xf32>
    %cst_44 = arith.constant 8.000000e+00 : f32
    %106 = vector.broadcast %cst_44 : f32 to vector<1x1x1xf32>
    %107 = arith.divf %105, %106 : vector<1x1x1xf32>
    %cst_45 = arith.constant 9.99999974E-6 : f32
    %108 = vector.broadcast %cst_45 : f32 to vector<1x1x1xf32>
    %109 = arith.addf %107, %108 : vector<1x1x1xf32>
    %110 = math.rsqrt %109 : vector<1x1x1xf32>
    %111 = vector.broadcast %110 : vector<1x1x1xf32> to vector<1x8x128xf32>
    %112 = arith.mulf %98, %111 : vector<1x8x128xf32>
    %113 = vector.shape_cast %87 : vector<8x128xf32> to vector<1x8x128xf32>
    %114 = arith.mulf %112, %113 : vector<1x8x128xf32>
    %115 = vector.shape_cast %88 : vector<8x128xf32> to vector<1x8x128xf32>
    %116 = arith.addf %114, %115 : vector<1x8x128xf32>
    %117 = vector.shape_cast %116 : vector<1x8x128xf32> to vector<8x128xf32>
    %118 = arith.truncf %117 : vector<8x128xf32> to vector<8x128xbf16>
    %c0_46 = arith.constant 0 : index
    %c0_47 = arith.constant 0 : index
    %119 = vector.load %arg10[%c0_46, %c0_47] : memref<128x512xbf16, #tpu.memory_space<vmem>>, vector<128x512xbf16>
    %cst_48 = arith.constant dense<0.000000e+00> : vector<8x512xf32>
    %120 = tpu.matmul %118, %119, %cst_48 {dimension_numbers = #tpu.dot_dimension_numbers<[1], [0], [0], [1], [0, 0, 1, 1], [], []>} : vector<8x128xbf16>, vector<128x512xbf16>, vector<8x512xf32> -> vector<8x512xf32>
    %c0_49 = arith.constant 0 : index
    %c0_50 = arith.constant 0 : index
    %121 = vector.load %arg11[%c0_49, %c0_50] : memref<1x512xf32, #tpu.memory_space<vmem>>, vector<1x512xf32>
    %122 = vector.broadcast %121 : vector<1x512xf32> to vector<8x512xf32>
    %123 = arith.addf %120, %122 : vector<8x512xf32>
    %124 = arith.negf %123 : vector<8x512xf32>
    %125 = math.exp %124 : vector<8x512xf32>
    %cst_51 = arith.constant 1.000000e+00 : f32
    %126 = vector.broadcast %cst_51 : f32 to vector<8x512xf32>
    %127 = arith.addf %126, %125 : vector<8x512xf32>
    %128 = arith.divf %126, %127 : vector<8x512xf32>
    %129 = arith.mulf %128, %123 : vector<8x512xf32>
    %130 = arith.truncf %129 : vector<8x512xf32> to vector<8x512xbf16>
    %c0_52 = arith.constant 0 : index
    %c0_53 = arith.constant 0 : index
    %131 = vector.load %arg12[%c0_52, %c0_53] : memref<512x128xbf16, #tpu.memory_space<vmem>>, vector<512x128xbf16>
    %cst_54 = arith.constant dense<0.000000e+00> : vector<8x128xf32>
    %132 = tpu.matmul %130, %131, %cst_54 {dimension_numbers = #tpu.dot_dimension_numbers<[1], [0], [0], [1], [0, 0, 1, 1], [], []>} : vector<8x512xbf16>, vector<512x128xbf16>, vector<8x128xf32> -> vector<8x128xf32>
    %c0_55 = arith.constant 0 : index
    %c0_56 = arith.constant 0 : index
    %133 = vector.load %arg13[%c0_55, %c0_56] : memref<1x128xf32, #tpu.memory_space<vmem>>, vector<1x128xf32>
    %134 = vector.broadcast %133 : vector<1x128xf32> to vector<8x128xf32>
    %135 = arith.addf %132, %134 : vector<8x128xf32>
    %136 = vector.shape_cast %135 : vector<8x128xf32> to vector<1x8x128xf32>
    %137 = arith.addf %136, %86 : vector<1x8x128xf32>
    %c0_57 = arith.constant 0 : index
    %c0_58 = arith.constant 0 : index
    %c0_59 = arith.constant 0 : index
    %138 = vector.load %arg14[%c0_57, %c0_58, %c0_59] : memref<1x8x128xf32, #tpu.memory_space<vmem>>, vector<1x8x128xf32>
    tpu.vector_store %arg14[%c0_57, %c0_58, %c0_59], %137 {strides = array<i32>} : memref<1x8x128xf32, #tpu.memory_space<vmem>>, vector<1x8x128xf32>,
    return
  }
  func.func @transform_0(%arg0: i32) -> (i32, i32, i32) {
    %c0_i32 = arith.constant 0 : i32
    %c0_i32_0 = arith.constant 0 : i32
    %c0_i32_1 = arith.constant 0 : i32
    return %arg0, %c0_i32, %c0_i32_0 : i32, i32, i32
  }
  func.func @transform_1(%arg0: i32) -> (i32, i32) {
    %c0_i32 = arith.constant 0 : i32
    %c0_i32_0 = arith.constant 0 : i32
    %c0_i32_1 = arith.constant 0 : i32
    return %c0_i32, %c0_i32_0 : i32, i32
  }
  func.func @transform_2(%arg0: i32) -> (i32, i32) {
    %c0_i32 = arith.constant 0 : i32
    %c0_i32_0 = arith.constant 0 : i32
    %c0_i32_1 = arith.constant 0 : i32
    return %c0_i32, %c0_i32_0 : i32, i32
  }
  func.func @transform_3(%arg0: i32) -> (i32, i32) {
    %c0_i32 = arith.constant 0 : i32
    %c0_i32_0 = arith.constant 0 : i32
    %c0_i32_1 = arith.constant 0 : i32
    return %c0_i32, %c0_i32_0 : i32, i32
  }
  func.func @transform_4(%arg0: i32) -> (i32, i32) {
    %c0_i32 = arith.constant 0 : i32
    %c0_i32_0 = arith.constant 0 : i32
    %c0_i32_1 = arith.constant 0 : i32
    return %c0_i32, %c0_i32_0 : i32, i32
  }
  func.func @transform_5(%arg0: i32) -> (i32, i32, i32) {
    %c0_i32 = arith.constant 0 : i32
    %c0_i32_0 = arith.constant 0 : i32
    %c0_i32_1 = arith.constant 0 : i32
    %c0_i32_2 = arith.constant 0 : i32
    return %c0_i32, %c0_i32_0, %c0_i32_1 : i32, i32, i32
  }
  func.func @transform_6(%arg0: i32) -> (i32, i32) {
    %c0_i32 = arith.constant 0 : i32
    %c0_i32_0 = arith.constant 0 : i32
    %c0_i32_1 = arith.constant 0 : i32
    return %c0_i32, %c0_i32_0 : i32, i32
  }
  func.func @transform_7(%arg0: i32) -> (i32, i32) {
    %c0_i32 = arith.constant 0 : i32
    %c0_i32_0 = arith.constant 0 : i32
    %c0_i32_1 = arith.constant 0 : i32
    return %c0_i32, %c0_i32_0 : i32, i32
  }
  func.func @transform_8(%arg0: i32) -> (i32, i32) {
    %c0_i32 = arith.constant 0 : i32
    %c0_i32_0 = arith.constant 0 : i32
    %c0_i32_1 = arith.constant 0 : i32
    return %c0_i32, %c0_i32_0 : i32, i32
  }
  func.func @transform_9(%arg0: i32) -> (i32, i32) {
    %c0_i32 = arith.constant 0 : i32
    %c0_i32_0 = arith.constant 0 : i32
    %c0_i32_1 = arith.constant 0 : i32
    return %c0_i32, %c0_i32_0 : i32, i32
  }
  func.func @transform_10(%arg0: i32) -> (i32, i32) {
    %c0_i32 = arith.constant 0 : i32
    %c0_i32_0 = arith.constant 0 : i32
    %c0_i32_1 = arith.constant 0 : i32
    return %c0_i32, %c0_i32_0 : i32, i32
  }
  func.func @transform_11(%arg0: i32) -> (i32, i32) {
    %c0_i32 = arith.constant 0 : i32
    %c0_i32_0 = arith.constant 0 : i32
    %c0_i32_1 = arith.constant 0 : i32
    return %c0_i32, %c0_i32_0 : i32, i32
  }
  func.func @transform_12(%arg0: i32) -> (i32, i32) {
    %c0_i32 = arith.constant 0 : i32
    %c0_i32_0 = arith.constant 0 : i32
    %c0_i32_1 = arith.constant 0 : i32
    return %c0_i32, %c0_i32_0 : i32, i32
  }
  func.func @transform_13(%arg0: i32) -> (i32, i32, i32) {
    %c0_i32 = arith.constant 0 : i32
    %c0_i32_0 = arith.constant 0 : i32
    %c0_i32_1 = arith.constant 0 : i32
    return %arg0, %c0_i32, %c0_i32_0 : i32, i32, i32
  }
}

</mosaic_0001>

<bundles_post_ra>
// kernel: transformer_block.1
= control target key start
LH: loop header
LB: loop body
LE: loop exit
PB: predicated region body
PF: predicated region fallthrough
CT: control target
= control target key end

     0   :  { %s3747_s0 = inlined_call_operand.hbm [shape: f32[2,8,128], index: 0, kind: input, shape index: {}]   ;;  %s3748_s1 = inlined_call_operand.hbm [shape: f32[8,128], index: 1, kind: input, shape index: {}]   ;;  %s3749_s2 = inlined_call_operand.hbm [shape: f32[8,128], index: 2, kind: input, shape index: {}]   ;;  %s3750_s3 = inlined_call_operand.hbm [shape: bf16[128,384], index: 3, kind: input, shape index: {}]   ;;  %s3751_s4 = inlined_call_operand.vmem [shape: f32[1,384], index: 4, kind: input, shape index: {}]   ;;  %s3752_s5 = inlined_call_operand.hbm [shape: bf16[2,64,128], index: 5, kind: input, shape index: {}]   ;;  %s3753_s6 = inlined_call_operand.hbm [shape: f32[1,128], index: 6, kind: input, shape index: {}]   ;;  %s3754_s7 = inlined_call_operand.hbm [shape: f32[8,128], index: 7, kind: input, shape index: {}]   ;;  %s3755_s8 = inlined_call_operand.hbm [shape: f32[8,128], index: 8, kind: input, shape index: {}]   ;;  %s3756_s9 = inlined_call_operand.hbm [shape: bf16[128,512], index: 9, kind: input, shape index: {}]   ;;  %s3757_s10 = inlined_call_operand.vmem [shape: f32[1,512], index: 10, kind: input, shape index: {}]   ;;  %s3758_s11 = inlined_call_operand.hbm [shape: bf16[512,128], index: 11, kind: input, shape index: {}]   ;;  %s3759_s12 = inlined_call_operand.vmem [shape: f32[1,128], index: 12, kind: input, shape index: {}]   ;;  %s3760_s13 = inlined_call_operand.hbm [shape: f32[2,8,128], index: 13, kind: output, shape index: {}]  }
   0x1   :  { %3762 = sst [smem:[#allocation27_spill]] %s3748_s1 }
   0x2   :  { %3763 = sst [smem:[#allocation28_spill]] %s3749_s2 }
   0x3   :  { %3764 = sst [smem:[#allocation29_spill]] %s3750_s3 }
   0x4   :  { %3765 = sst [smem:[#allocation30_spill]] %s3752_s5 }
   0x5   :  { %3766 = sst [smem:[#allocation31_spill]] %s3757_s10 }
   0x6   :  { %3767 = sst [smem:[#allocation32_spill]] %s3759_s12 }
   0x7   :  { %3768 = sst [smem:[#allocation33_spill]] %s3760_s13 }
   0x8   :  { %18 = vsyncpa [#allocation3], 0 }
   0x9   :  { %20 = vsyncpa [#allocation3 + $0x1], 0 }
   0xa   :  { %21 = vsyncpa [#allocation6], 0 }
   0xb   :  { %22 = vsyncpa [#allocation9], 0 }
   0xc   :  { %23 = vsyncpa [#allocation12], 0 }
   0xd   :  { %24 = vsyncpa [#allocation15], 0 }
   0xe   :  { %25 = vsyncpa [#allocation18], 0 }
   0xf   :  { %26 = vsyncpa [#allocation4], 0 }
  0x10   :  { %28 = vsyncpa [#allocation4 + $0x1], 0  ;;  %s3375_s25 = smov 0   ;;  %s3377_s26 = smov 0  }
  0x11   :  { %s3379_s27 = smov 0   ;;  %s3381_s28 = smov 0  }
  0x12 LB: > { %s3769_s1 = sld [smem:[#allocation27_spill]]  ;;  %s3399_s15 = sadd.s32 4294967295, %s3283_s28   ;;  %s3283_s28 = sphi %s3381_s28, %s3786_s28   ;;  %s3279_s27 = sphi %s3379_s27, %s3785_s27   ;;  %s3275_s26 = sphi %s3377_s26, %s3784_s26   ;;  %s3271_s25 = sphi %s3375_s25, %s3783_s25  }
  0x13   : > { %p2196_p0 = scmp.ge.s32.totalorder %s3283_s28, 1  ;;  %p55_p1 = scmp.eq.s32.totalorder %s3399_s15, 0 }
  0x14   : > { %p343_p2 = scmp.lt.s32.totalorder %s3283_s28, 3  ;;  %s3285_s17 = smov [#allocation5]  }
  0x15   : > { %s357_s18 = sshll.u32 %s3285_s17, 4  ;;  %s3771_s3 = sld [smem:[#allocation29_spill]]  ;;  %s358_s18 = int_to_ptr.vmem [resolvable:$true] %s357_s18 }
  0x16   : > { %p3404_p3 = pnand %p2196_p0, %p343_p2  ;;  %s3286_s23 = smov [#allocation8]  }
  0x17   : > { %s380_s24 = sshll.u32 %s3286_s23, 4  ;;  %s3287_s29 = smov 192   ;;  %s381_s24 = int_to_ptr.vmem [resolvable:$true] %s380_s24 }
  0x18   : > { %s355_s14 = sshll.u32 %s3769_s1, 4  ;;  %p2755_p5 = pneg %p3404_p3  ;;  %s356_s14 = int_to_ptr.hbm [resolvable:$true] %s355_s14 }
  0x19   : > { %s3288_s30 = smov 12   ;;  %s410_s20 = sshll.u32 %s3753_s6, 4  ;;  %s411_s20 = int_to_ptr.hbm [resolvable:$true] %s410_s20 }
  0x1a   : > { %p3416_p6 = pnand %p2755_p5, %p55_p1  ;;  %s3289_s1 = smov [#allocation11]  }
  0x1b   : > { %s378_s21 = sshll.u32 %s3771_s3, 4  ;;  %s412_s3 = sshll.u32 %s3289_s1, 4  ;;  %s379_s21 = int_to_ptr.hbm [resolvable:$true] %s378_s21  ;;  %s413_s3 = int_to_ptr.vmem [resolvable:$true] %s412_s3 }
  0x1c   : > { %2758 = dma.hbm_to_vmem [thread:$0]  (!%p3416_p6), %s356_s14, 128, %s358_s18, [#allocation6]  }
  0x1d   : > { %2764 = dma.hbm_to_vmem [thread:$0]  (!%p3416_p6), %s379_s21, 3072, %s381_s24, [#allocation9], %s3287_s29, %s3287_s29, %s3288_s30  }
  0x1e   : > { %s434_s23 = sshll.u32 %s3755_s8, 4  ;;  %s3290_s14 = smov [#allocation14]   ;;  %s435_s23 = int_to_ptr.hbm [resolvable:$true] %s434_s23 }
  0x1f   : > { %2770 = dma.hbm_to_vmem [thread:$0]  (!%p3416_p6), %s411_s20, 16, %s413_s3, [#allocation12]  }
  0x20   : > { %s436_s18 = sshll.u32 %s3290_s14, 4  ;;  %s3773_s2 = sld [smem:[#allocation28_spill]]  ;;  %s437_s18 = int_to_ptr.vmem [resolvable:$true] %s436_s18 }
  0x21   : > { %2776 = dma.hbm_to_vmem [thread:$0]  (!%p3416_p6), %s435_s23, 128, %s437_s18, [#allocation15]  }
  0x22   : > { %s3774_s5 = sld [smem:[#allocation30_spill]]  ;;  %s3291_s12 = smov [#allocation7]  }
  0x23   : > { %s369_s13 = sshll.u32 %s3291_s12, 4  ;;  %s3292_s3 = smov [#allocation10]   ;;  %s370_s13 = int_to_ptr.vmem [resolvable:$true] %s369_s13 }
  0x24   : > { %s397_s17 = sshll.u32 %s3292_s3, 4  ;;  %s3293_s10 = smov 64   ;;  %s398_s17 = int_to_ptr.vmem [resolvable:$true] %s397_s17 }
  0x25   : > { %s3294_s19 = smov 4   ;;  %s422_s14 = sshll.u32 %s3754_s7, 4  ;;  %s423_s14 = int_to_ptr.hbm [resolvable:$true] %s422_s14 }
  0x26   : > { %s367_s24 = sshll.u32 %s3773_s2, 4  ;;  %s3295_s18 = smov [#allocation13]   ;;  %s368_s24 = int_to_ptr.hbm [resolvable:$true] %s367_s24 }
  0x27   : > { %2761 = dma.hbm_to_vmem [thread:$0]  (!%p3416_p6), %s368_s24, 128, %s370_s13, [#allocation6]  }
  0x28   : > { %s395_s30 = sshll.u32 %s3774_s5, 4  ;;  %s424_s21 = sshll.u32 %s3295_s18, 4  ;;  %s396_s30 = int_to_ptr.hbm [resolvable:$true] %s395_s30  ;;  %s425_s21 = int_to_ptr.vmem [resolvable:$true] %s424_s21 }
  0x29   : > { %2767 = dma.hbm_to_vmem [thread:$0]  (!%p3416_p6), %s396_s30, 1024, %s398_s17, [#allocation9], %s3293_s10, %s3293_s10, %s3294_s19  }
  0x2a   : > { %s445_s24 = sshll.u32 %s3756_s9, 4  ;;  %s3296_s30 = smov [#allocation16]   ;;  %s446_s24 = int_to_ptr.hbm [resolvable:$true] %s445_s24 }
  0x2b   : > { %2773 = dma.hbm_to_vmem [thread:$0]  (!%p3416_p6), %s423_s14, 128, %s425_s21, [#allocation12]  }
  0x2c   : > { %s447_s12 = sshll.u32 %s3296_s30, 4  ;;  %s3297_s13 = smov 256   ;;  %s448_s12 = int_to_ptr.vmem [resolvable:$true] %s447_s12 }
  0x2d   : > { %s3298_s3 = smov 16   ;;  %s462_s23 = sshll.u32 %s3758_s11, 4  ;;  %s463_s23 = int_to_ptr.hbm [resolvable:$true] %s462_s23 }
  0x2e   : > { %2779 = dma.hbm_to_vmem [thread:$0]  (!%p3416_p6), %s446_s24, 4096, %s448_s12, [#allocation15], %s3297_s13, %s3297_s13, %s3298_s3  }
  0x2f   : > { %s3299_s14 = smov [#allocation17]   ;;  %s2195_s21 = sadd.s32 4294967294, %s3283_s28  }
  0x30   : > { %s464_s18 = sshll.u32 %s3299_s14, 4  ;;  %s3461_s1 = sadd.s32 1, %s3283_s28   ;;  %s465_s18 = int_to_ptr.vmem [resolvable:$true] %s464_s18 }
  0x31   : > { %2782 = dma.hbm_to_vmem [thread:$0]  (!%p3416_p6), %s463_s23, 4096, %s465_s18, [#allocation18], %s3293_s10, %s3293_s10, %s3294_s19  }
  0x32   : > { %s41_s29 = sadd.s32 1, %s3279_s27  ;;  %s38_s24 = ssub.s32 %s3283_s28, %s3461_s1 }
  0x33   : > { %p48_p7 = scmp.ne.s32.totalorder %s3279_s27, %s3275_s26  ;;  %p39_p8 = scmp.eq.s32.totalorder %s38_s24, 0 }
  0x34   : > { %p49_p9 = scmp.eq.s32.totalorder %s3283_s28, 0  ;;  %p54_p10 = scmp.ne.s32.totalorder %s3275_s26, %s3271_s25 }
  0x35   : > { %p330_p11 = scmp.eq.s32.totalorder %s3399_s15, 1  ;;  %p336_p0 = scmp.eq.s32.totalorder %s2195_s21, 1 }
  0x36   : > { %s3473_s30 = scalar_select %p39_p8, %s3279_s27, %s41_s29  }
  0x37   : > { %p3477_p12 = por %p55_p1, %p54_p10  ;;  %p3481_p13 = por %p330_p11, %p48_p7 }
  0x38   : > { %p50_p2 = por %p49_p9, %p48_p7  ;;  %s481_s19 = sand.u32 1, %s3279_s27  }
  0x39   : > { %p3486_p5 = por %p336_p0, %p54_p10  ;;  %p2800_p6 = scmp.lt.s32.totalorder %s3283_s28, 2 }
  0x3a   : > { %s2207_s13 = sshll.u32 %s481_s19, 3  ;;  %s2208_s3 = sshll.u32 %s3283_s28, 3 }
  0x3b   : > { %s489_s23 = scalar_lea.hbm %s3747_s0, %s2208_s3  ;;  %s485_s18 = scalar_lea.vmem [#allocation2], %s2207_s13 }
  0x3c   : > { %s491_s14 = sshll.u32 %s489_s23, 4  ;;  %s493_s29 = sshll.u32 %s485_s18, 4  ;;  %s492_s14 = int_to_ptr.hbm [resolvable:$true] %s491_s14  ;;  %s494_s29 = int_to_ptr.vmem [resolvable:$true] %s493_s29 }
  0x3d   : > { %p3495_p8 = pnand %p2800_p6, %p50_p2  ;;  %s482_s24 = scalar_lea.sflag [#allocation3], %s481_s19 }
  0x3e   : > { %s3167_s2 = sshra.s32 %s492_s14, 4  ;;  %s3174_s13 = scalar_lea.hbm %s3747_s0, 16  ;;  %s3168_s2 = int_to_ptr.hbm [resolvable:$true] %s3167_s2 }
  0x3f   : > { %s3169_s5 = scalar_lea.hbm %s3168_s2, 8  ;;  %p3171_p9 = pneg %p3495_p8 }
  0x40   : > { %p3170_p7 = scmp.ne.s32.totalorder %s3168_s2, %s3169_s5  ;;  %p3175_p0 = scmp.lt.s32.totalorder %s3168_s2, %s3747_s0 }
  0x41   : > { %p3176_p2 = scmp.lt.s32.totalorder %s3174_s13, %s3169_s5 }
  0x42   : > { %p3172_p10 = pnand %p3171_p9, %p3170_p7 }
  0x43   : > { %p3177_p6 = por %p3176_p2, %p3175_p0 }
  0x44   : > { %p3173_p11 = pneg %p3172_p10 }
  0x46   : > { %p3178_p4 = pnand %p3177_p6, %p3173_p11 }
  0x48   : > { %3181 = shalt.err (!%p3178_p4)
}
  0x49   : > { %2786 = dma.hbm_to_vmem [thread:$0]  (!%p3495_p8), %s492_s14, 128, %s494_s29, %s482_s24  }
  0x4a   : > { %502 = sbr.rel (%p3404_p3) target bundleno = 1941 (0x795), region = 72  ;;  %s3512_s19 = sand.u32 (!%p3404_p3), 1, %s3275_s26  }
  0x4b   : > { %s2210_s18 = sshll.u32 (!%p3404_p3), %s3512_s19, 3  ;;  %s505_s3 = scalar_lea.sflag (!%p3404_p3), [#allocation3], %s3512_s19 }
  0x4c   : > { %s508_s2 = scalar_lea.vmem (!%p3404_p3), [#allocation2], %s2210_s18 }
  0x4f   : > { %3242 = dma.done.wait (%p3477_p12), %s505_s3, 128  }
  0x50   : > { %3244 = vsyncadd (%p3477_p12), %s505_s3, 4294967168 }
  0x51   : > { %3246 = dma.done.wait (%p55_p1), [#allocation6], 256  }
  0x52   : > { %3248 = vsyncadd (%p55_p1), [#allocation6], 4294967040 }
  0x53   : > { %3250 = dma.done.wait (%p55_p1), [#allocation9], 4096  }
  0x54   : > { %3252 = vsyncadd (%p55_p1), [#allocation9], 4294963200 }
  0x55   : > { %3254 = dma.done.wait (%p55_p1), [#allocation12], 144  }
  0x56   : > { %3256 = vsyncadd (%p55_p1), [#allocation12], 4294967152 }
  0x57   : > { %3258 = dma.done.wait (%p55_p1), [#allocation15], 4224  }
  0x58   : > { %3260 = vsyncadd (%p55_p1), [#allocation15], 4294963072 }
  0x59   : > { %3262 = dma.done.wait (%p55_p1), [#allocation18], 4096  }
  0x5a   : > { %3264 = vsyncadd (%p55_p1), [#allocation18], 4294963200  ;;  %v3542_v0 = vld [vmem:[%s508_s2] sm:$0xff]  ;;  %v3300_v1 = vmov 128.0   ;;  %v3301_v5 = vmov 8.0   ;;  %s3302_s22 = smov 64  }
  0x5b   : > { %601 = vadd.xlane.f32.xlu0 %v3542_v0  ;;  %2865 = vrcp.f32 %v3300_v1  ;;  %v2307_v26 = vld [vmem:[#allocation8 + $0xa8] sm:$0xf]  ;;  %v2641_v27 = vld [vmem:[#allocation8 + $0xb0] sm:$0xf0]  ;;  %v2640_v28 = vld [vmem:[#allocation8 + $0xac] sm:$0xf] }
  0x5c   : > { %2867 = vrcp.f32 %v3301_v5  ;;  %v2308_v29 = vor.u32 %v2641_v27, %v2307_v26  ;;  %v2309_v30 = vld [vmem:[#allocation8 + $0xb4] sm:$0xf0]  ;;  %v2315_v31 = vld [vmem:[#allocation8 + $0xb0] sm:$0xf]  ;;  %v2642_v32 = vld [vmem:[#allocation8 + $0xb8] sm:$0xf0] }
  0x5d   : > { %v2312_v33 = vor.u32 %v2640_v28, %v2309_v30  ;;  %v2316_v34 = vor.u32 %v2642_v32, %v2315_v31  ;;  %v2295_v35 = vld [vmem:[#allocation8 + $0x90] sm:$0xf]  ;;  %v2638_v36 = vld [vmem:[#allocation8 + $0x98] sm:$0xf0]  ;;  %v2637_v37 = vld [vmem:[#allocation8 + $0x94] sm:$0xf] }
  0x5e   : > { %820 = vmatpush.bf16.msra.mxu0 %v2308_v29  ;;  %v2296_v38 = vor.u32 %v2638_v36, %v2295_v35  ;;  %v2297_v39 = vld [vmem:[#allocation8 + $0x9c] sm:$0xf0]  ;;  %v2303_v40 = vld [vmem:[#allocation8 + $0x98] sm:$0xf]  ;;  %v2639_v41 = vld [vmem:[#allocation8 + $0xa0] sm:$0xf0] }
  0x5f   : > { %833 = vmatpush.bf16.msra.mxu1 %v2312_v33  ;;  %846 = vmatpush.bf16.msra.mxu2 %v2316_v34  ;;  %v2300_v42 = vor.u32 %v2637_v37, %v2297_v39  ;;  %v2304_v43 = vor.u32 %v2639_v41, %v2303_v40  ;;  %v2283_v44 = vld [vmem:[#allocation8 + $0x78] sm:$0xf]  ;;  %v2635_v45 = vld [vmem:[#allocation8 + $0x80] sm:$0xf0]  ;;  %v2634_v46 = vld [vmem:[#allocation8 + $0x7c] sm:$0xf] }
  0x60   : > { %v2284_v47 = vor.u32 %v2635_v45, %v2283_v44  ;;  %v2285_v48 = vld [vmem:[#allocation8 + $0x84] sm:$0xf0]  ;;  %v2291_v49 = vld [vmem:[#allocation8 + $0x80] sm:$0xf]  ;;  %v2636_v50 = vld [vmem:[#allocation8 + $0x88] sm:$0xf0] }
  0x61   : > { %v2866_v2 = vpop.eup %2865  ;;  %v2288_v51 = vor.u32 %v2634_v46, %v2285_v48  ;;  %v2292_v52 = vor.u32 %v2636_v50, %v2291_v49  ;;  %v2271_v53 = vld [vmem:[#allocation8 + $0x60] sm:$0xf]  ;;  %v2632_v54 = vld [vmem:[#allocation8 + $0x68] sm:$0xf0]  ;;  %v2631_v55 = vld [vmem:[#allocation8 + $0x64] sm:$0xf] }
  0x62   : > { %v604_v3 = vmul.f32 128.0, %v2866_v2  ;;  %v2868_v7 = vpop.eup %2867  ;;  %vm608_vm0 = vweird.f32 %v2866_v2  ;;  %821 = vmatpush.bf16.msra.mxu0 %v2296_v38  ;;  %v2272_v56 = vor.u32 %v2632_v54, %v2271_v53  ;;  %v2273_v57 = vld [vmem:[#allocation8 + $0x6c] sm:$0xf0]  ;;  %v2279_v58 = vld [vmem:[#allocation8 + $0x68] sm:$0xf]  ;;  %vm876_vm5 = vcmask 1047556  }
  0x63   : > { %v618_v9 = vmul.f32 8.0, %v2868_v7  ;;  %vm622_vm1 = vweird.f32 %v2868_v7  ;;  %834 = vmatpush.bf16.msra.mxu1 %v2300_v42  ;;  %847 = vmatpush.bf16.msra.mxu2 %v2304_v43  ;;  %v2633_v59 = vld [vmem:[#allocation8 + $0x70] sm:$0xf0]  ;;  %v2276_v60 = vor.u32 %v2631_v55, %v2273_v57  ;;  %v2259_v62 = vld [vmem:[#allocation8 + $0x48] sm:$0xf]  ;;  %v600_v57 = vld [vmem:[#allocation7] sm:$0xff] }
  0x64   : > { %v605_v4 = vsub.f32 1.0, %v604_v3  ;;  %v2280_v61 = vor.u32 %v2633_v59, %v2279_v58  ;;  %v2629_v63 = vld [vmem:[#allocation8 + $0x50] sm:$0xf0]  ;;  %v2628_v1 = vld [vmem:[#allocation8 + $0x4c] sm:$0xf]  ;;  %vm1122_vm6 = vcmask 523264  }
  0x65   : > { %v619_v12 = vsub.f32 1.0, %v618_v9  ;;  %v2261_v3 = vld [vmem:[#allocation8 + $0x54] sm:$0xf0]  ;;  %v2630_v5 = vld [vmem:[#allocation8 + $0x58] sm:$0xf0]  ;;  %v599_v54 = vld [vmem:[#allocation5] sm:$0xff] }
  0x66   : > { %v606_v6 = vmul.f32 %v2866_v2, %v605_v4  ;;  %822 = vmatpush.bf16.msra.mxu0 %v2284_v47  ;;  %v2267_v4 = vld [vmem:[#allocation8 + $0x50] sm:$0xf]  ;;  %v2626_v9 = vld [vmem:[#allocation8 + $0x38] sm:$0xf0]  ;;  %v2243_v26 = vld [vmem:[#allocation8 + $0x20] sm:$0xf] }
  0x67   : > { %v620_v15 = vmul.f32 %v2868_v7, %v619_v12  ;;  %835 = vmatpush.bf16.msra.mxu1 %v2288_v51  ;;  %848 = vmatpush.bf16.msra.mxu2 %v2292_v52  ;;  %v2624_v27 = vld [vmem:[#allocation8 + $0x28] sm:$0xf0]  ;;  %v2223_v29 = vld [vmem:[#allocation8] sm:$0xf]  ;;  %v2619_v34 = vld [vmem:[#allocation8 + $0x4] sm:$0xf] }
  0x68   : > { %v607_v8 = vadd.f32 %v2866_v2, %v606_v6  ;;  %v2264_v6 = vor.u32 %v2628_v1, %v2261_v3  ;;  %v2244_v32 = vor.u32 %v2624_v27, %v2243_v26  ;;  %v2620_v33 = vld [vmem:[#allocation8 + $0x8] sm:$0xf0]  ;;  %v2225_v35 = vld [vmem:[#allocation8 + $0xc] sm:$0xf0]  ;;  %v2231_v36 = vld [vmem:[#allocation8 + $0x8] sm:$0xf] }
  0x69   : > { %v621_v18 = vadd.f32 %v2868_v7, %v620_v15  ;;  %v2627_v15 = vld [vmem:[#allocation8 + $0x40] sm:$0xf0]  ;;  %v2621_v37 = vld [vmem:[#allocation8 + $0x10] sm:$0xf0]  ;;  %v2224_v39 = vor.u32 %v2620_v33, %v2223_v29  ;;  %v2228_v41 = vor.u32 %v2619_v34, %v2225_v35  ;;  %vm1163_vm7 = vcmask 64512   ;;  %s3779_s21 = sld [smem:[#allocation31_spill]] }
  0x6a   : > { %v3545_v10 = vsel %vm608_vm0, %v2866_v2, %v607_v8  ;;  %823 = vmatpush.bf16.msra.mxu0 %v2272_v56  ;;  %v2260_v2 = vor.u32 %v2629_v63, %v2259_v62  ;;  %v2247_v8 = vld [vmem:[#allocation8 + $0x30] sm:$0xf]  ;;  %v2232_v42 = vor.u32 %v2621_v37, %v2231_v36  ;;  %vm1191_vm8 = vcmask 1043456   ;;  %s3780_s13 = sld [smem:[#allocation32_spill]]  ;;  %s2616_s20 = sshll.u32 %s3399_s15, 3 }
  0x6b   : > { %v3548_v21 = vsel %vm622_vm1, %v2868_v7, %v621_v18  ;;  %836 = vmatpush.bf16.msra.mxu1 %v2276_v60  ;;  %849 = vmatpush.bf16.msra.mxu2 %v2280_v61  ;;  %v2268_v7 = vor.u32 %v2630_v5, %v2267_v4  ;;  %v2248_v12 = vor.u32 %v2626_v9, %v2247_v8  ;;  %v3562_v61 = vld [vmem:[%s3751_s4] sm:$0x7]  ;;  %v3303_v9 = vmov 1983009808   ;;  %s3781_s2 = sld [smem:[#allocation33_spill]]  ;;  %s596_s16 = scalar_lea.vmem [#allocation19], %s2210_s18 }
  0x6c   : > { %v686_v62 = vperm.slane %v3562_v61, 0  ;;  %v687_v63 = vperm.slane %v3562_v61, 1  ;;  %s2024_s15 = scalar_lea.sflag [#allocation4], %s3512_s19 }
  0x6e   : > { %824 = vmatpush.bf16.msra.mxu0 %v2260_v2 }
  0x6f   : > { %837 = vmatpush.bf16.msra.mxu1 %v2264_v6  ;;  %850 = vmatpush.bf16.msra.mxu2 %v2268_v7 }
  0x71   : > { %s2034_s5 = scalar_lea.hbm %s3781_s2, %s2616_s20  ;;  %s3217_s17 = scalar_lea.hbm %s3781_s2, 16 }
  0x72   : > { %825 = vmatpush.bf16.msra.mxu0 %v2248_v12  ;;  %s2038_s14 = sshll.u32 %s2034_s5, 4  ;;  %s2039_s14 = int_to_ptr.hbm [resolvable:$true] %s2038_s14 }
  0x73   : > { %s3211_s29 = sshra.s32 %s2039_s14, 4  ;;  %s3212_s29 = int_to_ptr.hbm [resolvable:$true] %s3211_s29 }
  0x74   : > { %p3218_p12 = scmp.lt.s32.totalorder %s3212_s29, %s3781_s2 }
  0xce   : > { %v602_v11 = vpop.xlane.xlu0 %601 }
  0xcf   : > { %v610_v13 = vmul.f32 %v3545_v10, %v602_v11  ;;  %v2625_v11 = vld [vmem:[#allocation8 + $0x34] sm:$0xf] }
  0xd1   : > { %v611_v14 = vrot.slane %v610_v13, 4 }
  0xd3   : > { %v612_v16 = vadd.f32 %v611_v14, %v610_v13  ;;  %v2249_v13 = vld [vmem:[#allocation8 + $0x3c] sm:$0xf0]  ;;  %v2255_v14 = vld [vmem:[#allocation8 + $0x38] sm:$0xf] }
  0xd4   : > { %v2256_v18 = vor.u32 %v2627_v15, %v2255_v14 }
  0xd5   : > { %v613_v17 = vrot.slane %v612_v16, 2 }
  0xd6   : > { %851 = vmatpush.bf16.msra.mxu2 %v2256_v18 }
  0xd7   : > { %v614_v19 = vadd.f32 %v613_v17, %v612_v16  ;;  %v2252_v17 = vor.u32 %v2625_v11, %v2249_v13  ;;  %v872_v11 = vunpack.c.l.s4 %v3303_v9 }
  0xd9   : > { %v615_v20 = vrot.slane %v614_v19, 1  ;;  %838 = vmatpush.bf16.msra.mxu1 %v2252_v17  ;;  %v3569_v13 = vunpack.c.0.s8 %v872_v11 }
  0xda   : > { %852 = vmatpush.bf16.msra.mxu2 %v2244_v32 }
  0xdb   : > { %v616_v22 = vadd.f32 %v615_v20, %v614_v19  ;;  %v2235_v19 = vld [vmem:[#allocation8 + $0x18] sm:$0xf]  ;;  %v2623_v20 = vld [vmem:[#allocation8 + $0x20] sm:$0xf0] }
  0xdc   : > { %v2236_v28 = vor.u32 %v2623_v20, %v2235_v19  ;;  %v3304_v19 = vmov 1934713408  }
  0xdd   : > { %v624_v23 = vmul.f32 %v3548_v21, %v616_v22  ;;  %v2622_v22 = vld [vmem:[#allocation8 + $0x1c] sm:$0xf]  ;;  %v879_v20 = vunpack.c.l.s4 %v3304_v19 }
  0xde   : > { %826 = vmatpush.bf16.msra.mxu0 %v2236_v28  ;;  %853 = vmatpush.bf16.msra.mxu2 %v2232_v42 }
  0xdf   : > { %v3552_v24 = vsub.f32 %v3542_v0, %v624_v23 }
  0xe1   : > { %v626_v25 = vmul.f32 %v3552_v24, %v3552_v24 }
  0xe2   : > { %827 = vmatpush.bf16.msra.mxu0 %v2224_v39 }
  0xe3   : > { %627 = vadd.xlane.f32.xlu0 %v626_v25  ;;  %v2237_v25 = vld [vmem:[#allocation8 + $0x24] sm:$0xf0] }
  0xe4   : > { %v2240_v31 = vor.u32 %v2622_v22, %v2237_v25 }
  0xe6   : > { %839 = vmatpush.bf16.msra.mxu1 %v2240_v31  ;;  %v3573_v31 = vunpack.c.0.s8 %v879_v20 }
  0xea   : > { %840 = vmatpush.bf16.msra.mxu1 %v2228_v41 }
 0x156   : > { %v628_v16 = vpop.xlane.xlu0 %627 }
 0x157   : > { %v629_v23 = vmul.f32 %v628_v16, %v3545_v10 }
 0x159   : > { %v630_v30 = vrot.slane %v629_v23, 4 }
 0x15b   : > { %v631_v38 = vadd.f32 %v630_v30, %v629_v23 }
 0x15d   : > { %v632_v40 = vrot.slane %v631_v38, 2 }
 0x15f   : > { %v633_v43 = vadd.f32 %v632_v40, %v631_v38 }
 0x161   : > { %v634_v44 = vrot.slane %v633_v43, 1 }
 0x163   : > { %v635_v45 = vadd.f32 %v634_v44, %v633_v43 }
 0x165   : > { %v636_v46 = vmul.f32 %v635_v45, %v3548_v21 }
 0x167   : > { %v637_v47 = vadd.f32 1e-05, %v636_v46 }
 0x169   : > { %2869 = vrsqrt.f32 %v637_v47  ;;  %vm644_vm3 = vweird.f32 %v637_v47 }
 0x16f   : > { %v2870_v48 = vpop.eup %2869 }
 0x170   : > { %v639_v49 = vmul.f32 %v2870_v48, %v637_v47  ;;  %vm645_vm2 = vweird.f32 %v2870_v48 }
 0x171   : > { %vm646_vm4 = vmor %vm644_vm3, %vm645_vm2 }
 0x172   : > { %v640_v50 = vmul.f32 %v2870_v48, %v639_v49 }
 0x174   : > { %v641_v51 = vmul.f32 0.5, %v640_v50 }
 0x176   : > { %v642_v52 = vsub.f32 1.5, %v641_v51 }
 0x178   : > { %v643_v53 = vmul.f32 %v2870_v48, %v642_v52 }
 0x17a   : > { %v647_v55 = vsel %vm646_vm4, %v2870_v48, %v643_v53 }
 0x17b   : > { %v648_v56 = vmul.f32 %v647_v55, %v3552_v24 }
 0x17d   : > { %v649_v58 = vmul.f32 %v648_v56, %v599_v54 }
 0x17f   : > { %v650_v59 = vadd.f32 %v649_v58, %v600_v57 }
 0x181   : > { %v651_v60 = vpack.c.bf16 %v650_v59, %v650_v59 }
 0x183   : > { %828 = vmatmul.bf16.vlgmr.msra.gmra.mxu0 %v651_v60  ;;  %841 = vmatmul.bf16.vlgmr.msra.gmra.mxu1 %v651_v60 }
 0x184   : > { %854 = vmatmul.bf16.vlgmr.msra.gmra.mxu2 %v651_v60 }
 0x200   : > { %v829_v1 = vpop.f32.mrf.mxu0  ;;  %v842_v2 = vpop.f32.mrf.mxu1 }
 0x201   : > { %v830_v3 = vadd.f32 %v829_v1, %v686_v62  ;;  %v843_v24 = vadd.f32 %v842_v2, %v687_v63 }
 0x203   : > { %v859_v4 = vpack.c.bf16 %v843_v24, %v830_v3 }
 0x205   : > { %862 = vrot.lane.b32.xlu1 %v859_v4, %s3302_s22  ;;  %v949_v12 = vrot.slane %v859_v4, 4  ;;  %v867_v16 = vshrl.u32 %v859_v4, 16 }
 0x207   : > { %v3567_v5 = vpop.f32.mrf.mxu2  ;;  %v954_v22 = vshrl.u32 %v949_v12, 16 }
 0x208   : > { %v831_v6 = vpop.f32.mrf.mxu0  ;;  %v844_v7 = vpop.f32.mrf.mxu1 }
 0x20f   : > { %v857_v8 = vpop.f32.mrf.mxu2 }
 0x277   : > { %v863_v14 = vpop.permute.xlu1 %862 }
 0x278   : > { %v866_v15 = vpack.i.b16 %v863_v14, %v859_v4  ;;  %v868_v17 = vshrl.u32 %v863_v14, 16  ;;  %v950_v18 = vrot.slane %v863_v14, 4 }
 0x27a   : > { %v869_v23 = vpack.i.b16 %v868_v17, %v867_v16  ;;  %v874_v25 = vperm.slane %v866_v15, %v3569_v13  ;;  %v953_v26 = vpack.i.b16 %v950_v18, %v949_v12  ;;  %v955_v27 = vshrl.u32 %v950_v18, 16 }
 0x27c   : > { %v875_v28 = vrot.slane %v874_v25, 4  ;;  %v894_v29 = vperm.slane %v869_v23, %v3569_v13  ;;  %v956_v30 = vpack.i.b16 %v955_v27, %v954_v22  ;;  %v961_v32 = vperm.slane %v953_v26, %v3569_v13 }
 0x27d   : > { %v881_v46 = vperm.slane %v874_v25, %v3573_v31 }
 0x27e   : > { %v877_v33 = vsel %vm876_vm5, 0, %v875_v28  ;;  %v895_v34 = vrot.slane %v894_v29, 4  ;;  %v962_v36 = vrot.slane %v961_v32, 4  ;;  %v980_v37 = vperm.slane %v956_v30, %v3569_v13 }
 0x27f   : > { %v885_v35 = vperm.slane %v877_v33, %v3573_v31  ;;  %v967_v39 = vperm.slane %v961_v32, %v3573_v31  ;;  %v900_v41 = vperm.slane %v894_v29, %v3573_v31  ;;  %v886_v58 = vrot.slane %v881_v46, 4 }
 0x280   : > { %v896_v38 = vsel %vm876_vm5, 0, %v895_v34  ;;  %v963_v43 = vsel %vm876_vm5, 0, %v962_v36  ;;  %v981_v45 = vrot.slane %v980_v37, 4  ;;  %v986_v48 = vperm.slane %v980_v37, %v3573_v31 }
 0x281   : > { %v888_v40 = vrot.slane %v885_v35, 4  ;;  %v904_v42 = vperm.slane %v896_v38, %v3573_v31  ;;  %v971_v44 = vperm.slane %v963_v43, %v3573_v31  ;;  %v972_v49 = vrot.slane %v967_v39, 4 }
 0x282   : > { %v982_v51 = vsel %vm876_vm5, 0, %v981_v45  ;;  %v905_v53 = vrot.slane %v900_v41, 4  ;;  %v991_v59 = vrot.slane %v986_v48, 4  ;;  %v887_v9 = vsel %vm876_vm5, 0, %v886_v58 }
 0x283   : > { %v907_v47 = vrot.slane %v904_v42, 4  ;;  %v974_v50 = vrot.slane %v971_v44, 4  ;;  %v889_v52 = vsel %vm876_vm5, 0, %v888_v40  ;;  %v990_v55 = vperm.slane %v982_v51, %v3573_v31 }
 0x284   : > { %v914_v63 = vrot.slane %v889_v52, 4  ;;  %v973_v1 = vsel %vm876_vm5, 0, %v972_v49  ;;  %v906_v3 = vsel %vm876_vm5, 0, %v905_v53  ;;  %v992_v11 = vsel %vm876_vm5, 0, %v991_v59 }
 0x285   : > { %v908_v54 = vsel %vm876_vm5, 0, %v907_v47  ;;  %v975_v57 = vsel %vm876_vm5, 0, %v974_v50  ;;  %v993_v60 = vrot.slane %v990_v55, 4  ;;  %v995_v2 = vsel %vm876_vm5, %v974_v50, %v967_v39 }
 0x286   : > { %v931_v56 = vrot.slane %v908_v54, 4  ;;  %v1000_v62 = vrot.slane %v975_v57, 4  ;;  %v999_v12 = vperm.slane %v995_v2, %v3569_v13  ;;  %v915_v17 = vsel %vm876_vm5, %v914_v63, %v887_v9 }
 0x287   : > { %v994_v24 = vsel %vm876_vm5, 0, %v993_v60  ;;  %v1012_v15 = vsel %vm876_vm5, %v993_v60, %v986_v48  ;;  %v919_v25 = vperm.slane %v915_v17, %v3569_v13  ;;  %v926_v27 = vsel %vm876_vm5, %v907_v47, %v900_v41 }
 0x288   : > { %v1001_v4 = vsel %vm876_vm5, %v1000_v62, %v973_v1  ;;  %v1017_v7 = vrot.slane %v994_v24, 4  ;;  %v932_v8 = vsel %vm876_vm5, %v931_v56, %v906_v3  ;;  %v1016_v22 = vperm.slane %v1012_v15, %v3569_v13 }
 0x289   : > { %v1005_v6 = vperm.slane %v1001_v4, %v3569_v13  ;;  %v936_v19 = vperm.slane %v932_v8, %v3569_v13  ;;  %v909_v30 = vsel %vm876_vm5, %v888_v40, %v881_v46  ;;  %v920_v33 = vrot.slane %v919_v25, 4 }
 0x28a   : > { %v1018_v16 = vsel %vm876_vm5, %v1017_v7, %v992_v11  ;;  %v930_v34 = vperm.slane %v926_v27, %v3569_v13  ;;  %v913_v38 = vperm.slane %v909_v30, %v3569_v13  ;;  %v688_v58 = vperm.slane %v3562_v61, 2 }
 0x28b   : > { %v1006_v14 = vrot.slane %v1005_v6, 4  ;;  %v1022_v18 = vperm.slane %v1018_v16, %v3569_v13  ;;  %v937_v29 = vrot.slane %v936_v19, 4 }
 0x28c   : > { %v921_v43 = vsel %vm876_vm5, %v920_v33, %v913_v38  ;;  %v856_v59 = vadd.f32 %v3567_v5, %v688_v58  ;;  %v2650_v58 = vld [vmem:[#allocation10 + $0x38] sm:$0xff] }
 0x28d   : > { %v1007_v20 = vsel %vm876_vm5, %v1006_v14, %v999_v12  ;;  %v1023_v23 = vrot.slane %v1022_v18, 4  ;;  %v938_v39 = vsel %vm876_vm5, %v937_v29, %v930_v34  ;;  %v925_v45 = vperm.slane %v921_v43, %v3573_v31  ;;  %1277 = vmatpush.bf16.msrb.mxu1 %v2650_v58  ;;  %v2463_v58 = vld [vmem:[#allocation16 + $0xd8] sm:$0xf0] }
 0x28e   : > { %v1011_v26 = vperm.slane %v1007_v20, %v3573_v31  ;;  %v942_v44 = vperm.slane %v938_v39, %v3573_v31  ;;  %v860_v60 = vpack.c.bf16 %v856_v59, %v856_v59 }
 0x28f   : > { %v1024_v28 = vsel %vm876_vm5, %v1023_v23, %v1016_v22  ;;  %v946_v48 = vshrl.u32 %v925_v45, 16 }
 0x290   : > { %v1028_v32 = vperm.slane %v1024_v28, %v3573_v31  ;;  %v1032_v36 = vshrl.u32 %v1011_v26, 16  ;;  %v945_v46 = vpack.i.b16 %v942_v44, %v925_v45  ;;  %v947_v47 = vshrl.u32 %v942_v44, 16 }
 0x291   : > { %v1041_v7 = vshrl.u32 %v860_v60, 16 }
 0x292   : > { %v1031_v35 = vpack.i.b16 %v1028_v32, %v1011_v26  ;;  %v1033_v37 = vshrl.u32 %v1028_v32, 16  ;;  %v948_v49 = vpack.i.b16 %v947_v47, %v946_v48 }
 0x294   : > { %v1127_v41 = vsel %vm1122_vm6, %v1031_v35, 0  ;;  %v1034_v42 = vpack.i.b16 %v1033_v37, %v1032_v36 }
 0x295   : > { %1136 = vmatpush.bf16.xpose.msra.mxu3 %v1127_v41 }
 0x296   : > { %v1146_v40 = vsel %vm1122_vm6, %v1034_v42, 0 }
 0x29c   : > { %2317 = vmatmul.msk.bf16.vlgmr.msra.gmra.mxu3 %vm1122_vm6, %v945_v46 }
 0x29d   : > { %1155 = vmatpush.bf16.xpose.msrb.mxu3 %v1146_v40 }
 0x2ac   : > { %2318 = vmatmul.msk.bf16.vlgmr.msrb.gmra.mxu3 %vm1122_vm6, %v948_v49 }
 0x31f   : > { %v1138_v50 = vpop.f32.mrf.mxu3 }
 0x320   : > { %v1161_v51 = vmul.f32 0.125, %v1138_v50 }
 0x322   : > { %v1164_v52 = vsel %vm1163_vm7, %v1161_v51, -inf }
 0x323   : > { %1165 = vmax.xlane.f32.xlu1 %v1164_v52 }
 0x327   : > { %v1140_v53 = vpop.f32.mrf.mxu3 }
 0x32f   : > { %v1157_v54 = vpop.f32.mrf.mxu3 }
 0x330   : > { %v1162_v55 = vmul.f32 0.125, %v1157_v54 }
 0x332   : > { %v1167_v56 = vsel %vm1163_vm7, %v1162_v55, -inf }
 0x333   : > { %1168 = vmax.xlane.f32.xlu2 %v1167_v56 }
 0x337   : > { %v1159_v57 = vpop.f32.mrf.mxu3 }
 0x338   : > { %v2646_v57 = vld [vmem:[#allocation10 + $0x18] sm:$0xff] }
 0x339   : > { %1317 = vmatpush.bf16.msrb.mxu2 %v2646_v57  ;;  %v2676_v57 = vld [vmem:[#allocation16 + $0xcc] sm:$0xf] }
 0x34b   : > { %1036 = vrot.lane.b32.xlu2 %v860_v60, %s3302_s22  ;;  %s2036_s22 = sshll.u32 %s596_s16, 4  ;;  %s2037_s22 = int_to_ptr.vmem [resolvable:$true] %s2036_s22 }
 0x396   : > { %v1166_v62 = vpop.xlane.xlu1 %1165 }
 0x397   : > { %v1170_v63 = vsub.f32 %v1161_v51, %v1166_v62 }
 0x399   : > { %v1172_v1 = vmul.f32 1.442695, %v1170_v63 }
 0x39b   : > { %2871 = vpow2.f32 %v1172_v1 }
 0x3a1   : > { %v3630_v2 = vpop.eup %2871 }
 0x3a2   : > { %v1176_v3 = vsel %vm1163_vm7, %v3630_v2, 0.0 }
 0x3a3   : > { %1177 = vadd.xlane.f32.xlu0 %v1176_v3 }
 0x3a6   : > { %v1169_v24 = vpop.xlane.xlu2 %1168 }
 0x3a7   : > { %v1171_v4 = vsub.f32 %v1162_v55, %v1169_v24 }
 0x3a9   : > { %v1174_v6 = vmul.f32 1.442695, %v1171_v4 }
 0x3ab   : > { %2873 = vpow2.f32 %v1174_v6  ;;  %v2643_v6 = vld [vmem:[#allocation10] sm:$0xff] }
 0x3ae   : > { %v1037_v61 = vpop.permute.xlu2 %1036 }
 0x3af   : > { %v1040_v5 = vpack.i.b16 %v1037_v61, %v860_v60  ;;  %v1042_v8 = vshrl.u32 %v1037_v61, 16  ;;  %v2644_v60 = vld [vmem:[#allocation10 + $0x8] sm:$0xff]  ;;  %v2649_v61 = vld [vmem:[#allocation10 + $0x30] sm:$0xff] }
 0x3b0   : > { %1278 = vmatpush.bf16.msrb.mxu1 %v2649_v61  ;;  %v2447_v61 = vld [vmem:[#allocation16 + $0xb8] sm:$0xf0] }
 0x3b1   : > { %v3634_v9 = vpop.eup %2873  ;;  %v1043_v11 = vpack.i.b16 %v1042_v8, %v1041_v7  ;;  %v1048_v12 = vperm.slane %v1040_v5, %v3569_v13  ;;  %v2648_v7 = vld [vmem:[#allocation10 + $0x28] sm:$0xff]  ;;  %v2647_v5 = vld [vmem:[#allocation10 + $0x20] sm:$0xff] }
 0x3b2   : > { %v1179_v14 = vsel %vm1163_vm7, %v3634_v9, 0.0 }
 0x3b3   : > { %v1049_v15 = vrot.slane %v1048_v12, 4  ;;  %v1067_v16 = vperm.slane %v1043_v11, %v3569_v13  ;;  %1180 = vadd.xlane.f32.xlu0 %v1179_v14  ;;  %v1054_v17 = vperm.slane %v1048_v12, %v3573_v31 }
 0x3b4   : > { %1279 = vmatpush.bf16.msrb.mxu1 %v2648_v7 }
 0x3b5   : > { %v1050_v18 = vsel %vm876_vm5, 0, %v1049_v15  ;;  %v1068_v19 = vrot.slane %v1067_v16, 4  ;;  %v1073_v22 = vperm.slane %v1067_v16, %v3573_v31  ;;  %v1059_v25 = vrot.slane %v1054_v17, 4  ;;  %v2863_v16 = vld [vmem:[#allocation11] ss:$0 sm:$0xff] }
 0x3b6   : > { %v1058_v20 = vperm.slane %v1050_v18, %v3573_v31 }
 0x3b7   : > { %v1069_v23 = vsel %vm876_vm5, 0, %v1068_v19  ;;  %v1078_v29 = vrot.slane %v1073_v22, 4  ;;  %v1060_v33 = vsel %vm876_vm5, 0, %v1059_v25 }
 0x3b8   : > { %v1061_v26 = vrot.slane %v1058_v20, 4  ;;  %v1077_v27 = vperm.slane %v1069_v23, %v3573_v31  ;;  %1280 = vmatpush.bf16.msrb.mxu1 %v2647_v5  ;;  %v2421_v5 = vld [vmem:[#allocation16 + $0x80] sm:$0xf] }
 0x3b9   : > { %v1079_v38 = vsel %vm876_vm5, 0, %v1078_v29 }
 0x3ba   : > { %v1062_v28 = vsel %vm876_vm5, 0, %v1061_v26  ;;  %v1080_v30 = vrot.slane %v1077_v27, 4  ;;  %v1082_v35 = vsel %vm876_vm5, %v1061_v26, %v1054_v17 }
 0x3bb   : > { %v1087_v32 = vrot.slane %v1062_v28, 4  ;;  %v1086_v43 = vperm.slane %v1082_v35, %v3569_v13 }
 0x3bc   : > { %v1081_v34 = vsel %vm876_vm5, 0, %v1080_v30  ;;  %v1099_v41 = vsel %vm876_vm5, %v1080_v30, %v1073_v22 }
 0x3bd   : > { %v1088_v36 = vsel %vm876_vm5, %v1087_v32, %v1060_v33  ;;  %v1104_v37 = vrot.slane %v1081_v34, 4  ;;  %v1103_v46 = vperm.slane %v1099_v41, %v3569_v13  ;;  %v2471_v41 = vld [vmem:[#allocation16 + $0xf0] sm:$0xf0] }
 0x3be   : > { %v1092_v39 = vperm.slane %v1088_v36, %v3569_v13  ;;  %v2469_v36 = vld [vmem:[#allocation16 + $0xe0] sm:$0xf] }
 0x3bf   : > { %v1105_v42 = vsel %vm876_vm5, %v1104_v37, %v1079_v38  ;;  %v2681_v37 = vld [vmem:[#allocation16 + $0xec] sm:$0xf0]  ;;  %v2679_v38 = vld [vmem:[#allocation16 + $0xe4] sm:$0xf] }
 0x3c0   : > { %v1093_v40 = vrot.slane %v1092_v39, 4  ;;  %v1109_v44 = vperm.slane %v1105_v42, %v3569_v13  ;;  %v2645_v13 = vld [vmem:[#allocation10 + $0x10] sm:$0xff]  ;;  %v2470_v39 = vor.u32 %v2681_v37, %v2469_v36  ;;  %v2477_v42 = vld [vmem:[#allocation16 + $0xe8] sm:$0xf]  ;;  %v2661_v37 = vld [vmem:[#allocation16 + $0x4c] sm:$0xf0] }
 0x3c1   : > { %1318 = vmatpush.bf16.msrb.mxu2 %v2645_v13  ;;  %v2466_v13 = vor.u32 %v2676_v57, %v2463_v58  ;;  %v2389_v36 = vld [vmem:[#allocation16 + $0x40] sm:$0xf]  ;;  %v2381_v57 = vld [vmem:[#allocation16 + $0x28] sm:$0xf]  ;;  %v2658_v58 = vld [vmem:[#allocation16 + $0x34] sm:$0xf0] }
 0x3c2   : > { %v1094_v45 = vsel %vm876_vm5, %v1093_v40, %v1086_v43  ;;  %v1110_v47 = vrot.slane %v1109_v44, 4  ;;  %v2682_v43 = vld [vmem:[#allocation16 + $0xf4] sm:$0xf0]  ;;  %v2474_v40 = vor.u32 %v2679_v38, %v2471_v41  ;;  %v2659_v38 = vld [vmem:[#allocation16 + $0x44] sm:$0xf]  ;;  %v2390_v41 = vor.u32 %v2661_v37, %v2389_v36  ;;  %v2705_v36 = vld [vmem:[#allocation17 + $0xb0] sm:$0xff] }
 0x3c3   : > { %v1098_v48 = vperm.slane %v1094_v45, %v3573_v31  ;;  %v2478_v44 = vor.u32 %v2682_v43, %v2477_v42  ;;  %v2680_v45 = vld [vmem:[#allocation16 + $0xec] sm:$0xf]  ;;  %v2391_v42 = vld [vmem:[#allocation16 + $0x50] sm:$0xf0]  ;;  %v2397_v43 = vld [vmem:[#allocation16 + $0x48] sm:$0xf] }
 0x3c4   : > { %v1111_v49 = vsel %vm876_vm5, %v1110_v47, %v1103_v46  ;;  %v2479_v46 = vld [vmem:[#allocation16 + $0xf8] sm:$0xf0] }
 0x3c5   : > { %v1115_v50 = vperm.slane %v1111_v49, %v3573_v31  ;;  %v1119_v52 = vshrl.u32 %v1098_v48, 16  ;;  %1319 = vmatpush.bf16.msrb.mxu2 %v2644_v60  ;;  %v2482_v47 = vor.u32 %v2680_v45, %v2479_v46  ;;  %1599 = vmatpush.bf16.msra.mxu1 %v2478_v44  ;;  %v2677_v49 = vld [vmem:[#allocation16 + $0xcc] sm:$0xf0]  ;;  %v2394_v45 = vor.u32 %v2659_v38, %v2391_v42  ;;  %v2690_v37 = vld [vmem:[#allocation17 + $0x38] sm:$0xff] }
 0x3c6   : > { %v2673_v60 = vld [vmem:[#allocation16 + $0xac] sm:$0xf0]  ;;  %v2714_v38 = vld [vmem:[#allocation17 + $0xf8] sm:$0xff] }
 0x3c7   : > { %v1118_v51 = vpack.i.b16 %v1115_v50, %v1098_v48  ;;  %v1120_v53 = vshrl.u32 %v1115_v50, 16  ;;  %v2453_v48 = vld [vmem:[#allocation16 + $0xc0] sm:$0xf]  ;;  %v2675_v50 = vld [vmem:[#allocation16 + $0xc4] sm:$0xf]  ;;  %v2713_v42 = vld [vmem:[#allocation17 + $0xf0] sm:$0xff] }
 0x3c9   : > { %v1193_v54 = vsel %vm1191_vm8, %v1118_v51, 0  ;;  %v1121_v55 = vpack.i.b16 %v1120_v53, %v1119_v52  ;;  %1320 = vmatpush.bf16.msrb.mxu2 %v2643_v6  ;;  %v2454_v51 = vor.u32 %v2677_v49, %v2453_v48  ;;  %v2455_v52 = vld [vmem:[#allocation16 + $0xd0] sm:$0xf0]  ;;  %v2461_v53 = vld [vmem:[#allocation16 + $0xc8] sm:$0xf] }
 0x3ca   : > { %1202 = vmatpush.bf16.msra.mxu3 %v1193_v54  ;;  %v2678_v54 = vld [vmem:[#allocation16 + $0xd4] sm:$0xf0]  ;;  %v2672_v6 = vld [vmem:[#allocation16 + $0xac] sm:$0xf]  ;;  %v2399_v48 = vld [vmem:[#allocation16 + $0x58] sm:$0xf0] }
 0x3cb   : > { %v1212_v56 = vsel %vm1191_vm8, %v1121_v55, 0  ;;  %v2458_v55 = vor.u32 %v2675_v50, %v2455_v52  ;;  %v2450_v7 = vor.u32 %v2672_v6, %v2447_v61  ;;  %v2373_v49 = vld [vmem:[#allocation16 + $0x20] sm:$0xf]  ;;  %v2655_v52 = vld [vmem:[#allocation16 + $0x24] sm:$0xf] }
 0x3cc   : > { %1221 = vmatpush.bf16.msrb.mxu0 %v1212_v56  ;;  %v2462_v56 = vor.u32 %v2678_v54, %v2461_v53  ;;  %v2375_v53 = vld [vmem:[#allocation16 + $0x30] sm:$0xf0]  ;;  %v2654_v6 = vld [vmem:[#allocation16 + $0x14] sm:$0xf0]  ;;  %v2652_v61 = vld [vmem:[#allocation16 + $0xc] sm:$0xf] }
 0x3cd   : > { %1612 = vmatpush.bf16.msra.mxu2 %v2482_v47  ;;  %v2660_v47 = vld [vmem:[#allocation16 + $0x4c] sm:$0xf] }
 0x3ce   : > { %1573 = vmatpush.bf16.msrb.mxu3 %v2470_v39  ;;  %1600 = vmatpush.bf16.msra.mxu1 %v2462_v56  ;;  %v2402_v50 = vor.u32 %v2660_v47, %v2399_v48  ;;  %v2378_v56 = vor.u32 %v2655_v52, %v2375_v53  ;;  %v2702_v47 = vld [vmem:[#allocation17 + $0x98] sm:$0xff]  ;;  %v2687_v48 = vld [vmem:[#allocation17 + $0x20] sm:$0xff]  ;;  %v1403_v52 = vld [vmem:[%s3779_s21] sm:$0xf]  ;;  %s3213_s21 = scalar_lea.hbm %s3212_s29, 8 }
 0x3cf   : > { %v2686_v53 = vld [vmem:[#allocation17 + $0x18] sm:$0xff]  ;;  %p3214_p1 = scmp.ne.s32.totalorder %s3212_s29, %s3213_s21  ;;  %p3219_p8 = scmp.lt.s32.totalorder %s3217_s17, %s3213_s21 }
 0x3d0   : > { %1586 = vmatpush.bf16.msra.mxu0 %v2474_v40  ;;  %v2662_v40 = vld [vmem:[#allocation16 + $0x54] sm:$0xf0] }
 0x3d1   : > { %1613 = vmatpush.bf16.msra.mxu2 %v2466_v13  ;;  %v2398_v46 = vor.u32 %v2662_v40, %v2397_v43  ;;  %v2382_v13 = vor.u32 %v2658_v58, %v2381_v57  ;;  %v2695_v43 = vld [vmem:[#allocation17 + $0x60] sm:$0xff]  ;;  %v2700_v57 = vld [vmem:[#allocation17 + $0x88] sm:$0xff]  ;;  %v1407_v58 = vperm.slane %v1403_v52, 2  ;;  %p3215_p3 = pnand %p3214_p1, %p3481_p13  ;;  %p3220_p7 = por %p3219_p8, %p3218_p12 }
 0x3d2   : > { %1574 = vmatpush.bf16.msrb.mxu3 %v2454_v51  ;;  %v2657_v51 = vld [vmem:[#allocation16 + $0x2c] sm:$0xf0]  ;;  %v2703_v40 = vld [vmem:[#allocation17 + $0xa0] sm:$0xff] }
 0x3d3   : > { %p3216_p4 = pneg %p3215_p3 }
 0x3d4   : > { %1587 = vmatpush.bf16.msra.mxu0 %v2458_v55  ;;  %v2374_v55 = vor.u32 %v2657_v51, %v2373_v49  ;;  %v2711_v49 = vld [vmem:[#allocation17 + $0xe0] sm:$0xff]  ;;  %v2701_v51 = vld [vmem:[#allocation17 + $0x90] sm:$0xff] }
 0x3d5   : > { %1614 = vmatpush.bf16.msra.mxu2 %v2450_v7  ;;  %p3221_p9 = pnand %p3220_p7, %p3216_p4 }
 0x416   : > { %v1178_v59 = vpop.xlane.xlu0 %1177 }
 0x417   : > { %2875 = vrcp.f32 %v1178_v59  ;;  %v2437_v59 = vld [vmem:[#allocation16 + $0xa0] sm:$0xf] }
 0x41d   : > { %v2876_v31 = vpop.eup %2875 }
 0x41e   : > { %v1184_v62 = vmul.f32 %v2876_v31, %v3630_v2  ;;  %v2671_v31 = vld [vmem:[#allocation16 + $0xa4] sm:$0xf] }
 0x420   : > { %v1186_v63 = vpack.c.bf16 %v1184_v62, %v1184_v62  ;;  %v2438_v62 = vor.u32 %v2673_v60, %v2437_v59  ;;  %v2383_v59 = vld [vmem:[#allocation16 + $0x38] sm:$0xf0]  ;;  %v2357_v60 = vld [vmem:[#allocation16] sm:$0xf] }
 0x422   : > { %2319 = vmatmul.msk.bf16.vlgmr.msra.gmra.mxu3 %vm1163_vm7, %v1186_v63  ;;  %v2439_v63 = vld [vmem:[#allocation16 + $0xb0] sm:$0xf0] }
 0x423   : > { %1575 = vmatpush.bf16.msrb.mxu3 %v2438_v62 }
 0x426   : > { %v1181_v1 = vpop.xlane.xlu0 %1180 }
 0x427   : > { %2877 = vrcp.f32 %v1181_v1  ;;  %v2445_v1 = vld [vmem:[#allocation16 + $0xa8] sm:$0xf] }
 0x42d   : > { %v2878_v3 = vpop.eup %2877 }
 0x42e   : > { %v1185_v24 = vmul.f32 %v2878_v3, %v3634_v9  ;;  %v2674_v3 = vld [vmem:[#allocation16 + $0xb4] sm:$0xf0] }
 0x430   : > { %v1187_v4 = vpack.c.bf16 %v1185_v24, %v1185_v24  ;;  %v2442_v24 = vor.u32 %v2671_v31, %v2439_v63  ;;  %v2653_v63 = vld [vmem:[#allocation16 + $0xc] sm:$0xf0] }
 0x432   : > { %2320 = vmatmul.msk.bf16.vlgmr.msrb.gmra.mxu0 %vm1163_vm7, %v1187_v4  ;;  %v2446_v4 = vor.u32 %v2674_v3, %v2445_v1  ;;  %v2651_v1 = vld [vmem:[#allocation16 + $0x4] sm:$0xf]  ;;  %v2359_v3 = vld [vmem:[#allocation16 + $0x10] sm:$0xf0] }
 0x433   : > { %1588 = vmatpush.bf16.msra.mxu0 %v2442_v24  ;;  %v2358_v24 = vor.u32 %v2653_v63, %v2357_v60  ;;  %v2699_v63 = vld [vmem:[#allocation17 + $0x80] sm:$0xff] }
 0x434   : > { %1601 = vmatpush.bf16.msra.mxu1 %v2446_v4  ;;  %v2365_v4 = vld [vmem:[#allocation16 + $0x8] sm:$0xf] }
 0x4a5   : > { %v1204_v2 = vpop.f32.mrf.mxu3 }
 0x4a6   : > { %v1227_v8 = vpack.c.bf16 %v1204_v2, %v1204_v2  ;;  %v2669_v2 = vld [vmem:[#allocation16 + $0x8c] sm:$0xf0] }
 0x4a8   : > { %2354 = vmatmul.msk.bf16.vlgmr.msrb.gmra.mxu2 %vm1122_vm6, %v1227_v8  ;;  %v2667_v8 = vld [vmem:[#allocation16 + $0x84] sm:$0xf] }
 0x4ad   : > { %v1206_v11 = vpop.f32.mrf.mxu3 }
 0x4ae   : > { %v2422_v11 = vor.u32 %v2669_v2, %v2421_v5  ;;  %v2362_v5 = vor.u32 %v2651_v1, %v2359_v3  ;;  %v2366_v2 = vor.u32 %v2654_v6, %v2365_v4  ;;  %v2684_v4 = vld [vmem:[#allocation17 + $0x8] sm:$0xff] }
 0x4af   : > { %v1223_v12 = vpop.f32.mrf.mxu0  ;;  %v2708_v6 = vld [vmem:[#allocation17 + $0xc8] sm:$0xff] }
 0x4b0   : > { %v1236_v14 = vpack.c.bf16 %v1223_v12, %v1223_v12  ;;  %v2423_v12 = vld [vmem:[#allocation16 + $0x90] sm:$0xf0]  ;;  %1576 = vmatpush.bf16.msrb.mxu3 %v2422_v11 }
 0x4b2   : > { %2337 = vmatmul.msk.bf16.vlgmr.msrb.gmra.mxu1 %vm1122_vm6, %v1236_v14  ;;  %v2429_v14 = vld [vmem:[#allocation16 + $0x88] sm:$0xf] }
 0x4b7   : > { %v1225_v9 = vpop.f32.mrf.mxu0 }
 0x4b8   : > { %v2670_v9 = vld [vmem:[#allocation16 + $0x94] sm:$0xf0] }
 0x52b   : > { %v1322_v15 = vpop.f32.mrf.mxu2 }
 0x52f   : > { %v1282_v17 = vpop.f32.mrf.mxu1 }
 0x530   : > { %v1323_v18 = vadd.f32 %v1322_v15, %v1282_v17  ;;  %v2426_v15 = vor.u32 %v2667_v8, %v2423_v12  ;;  %v2668_v17 = vld [vmem:[#allocation16 + $0x8c] sm:$0xf]  ;;  %v2367_v8 = vld [vmem:[#allocation16 + $0x18] sm:$0xf0] }
 0x531   : > { %v2370_v11 = vor.u32 %v2652_v61, %v2367_v8 }
 0x532   : > { %v1330_v19 = vadd.f32 %v2863_v16, %v1323_v18  ;;  %v2430_v16 = vor.u32 %v2670_v9, %v2429_v14  ;;  %v2431_v18 = vld [vmem:[#allocation16 + $0x98] sm:$0xf0]  ;;  %1589 = vmatpush.bf16.msra.mxu0 %v2426_v15 }
 0x533   : > { %v1324_v20 = vpop.f32.mrf.mxu2 }
 0x534   : > { %v3669_v22 = vadd.f32 %v1330_v19, %v3542_v0  ;;  %v2434_v19 = vor.u32 %v2668_v17, %v2431_v18  ;;  %1602 = vmatpush.bf16.msra.mxu1 %v2430_v16  ;;  %v2405_v20 = vld [vmem:[#allocation16 + $0x60] sm:$0xf] }
 0x536   : > { %1334 = vadd.xlane.f32.xlu0 %v3669_v22  ;;  %1615 = vmatpush.bf16.msra.mxu2 %v2434_v19 }
 0x537   : > { %v1284_v23 = vpop.f32.mrf.mxu1 }
 0x538   : > { %v2665_v23 = vld [vmem:[#allocation16 + $0x6c] sm:$0xf0] }
 0x5a9   : > { %v1335_v25 = vpop.xlane.xlu0 %1334 }
 0x5aa   : > { %v1336_v26 = vmul.f32 %v1335_v25, %v3545_v10  ;;  %v2663_v25 = vld [vmem:[#allocation16 + $0x64] sm:$0xf] }
 0x5ac   : > { %v1337_v27 = vrot.slane %v1336_v26, 4 }
 0x5ae   : > { %v1338_v28 = vadd.f32 %v1337_v27, %v1336_v26  ;;  %v2406_v26 = vor.u32 %v2665_v23, %v2405_v20  ;;  %v2407_v27 = vld [vmem:[#allocation16 + $0x70] sm:$0xf0] }
 0x5b0   : > { %v1339_v29 = vrot.slane %v1338_v28, 2  ;;  %1577 = vmatpush.bf16.msrb.mxu3 %v2406_v26  ;;  %v1332_v26 = vld [vmem:[#allocation13] sm:$0xff] }
 0x5b2   : > { %v1340_v30 = vadd.f32 %v1339_v29, %v1338_v28  ;;  %v2413_v28 = vld [vmem:[#allocation16 + $0x68] sm:$0xf]  ;;  %v2666_v29 = vld [vmem:[#allocation16 + $0x74] sm:$0xf0] }
 0x5b4   : > { %v1341_v32 = vrot.slane %v1340_v30, 1  ;;  %1578 = vmatpush.bf16.msrb.mxu3 %v2390_v41  ;;  %v2689_v41 = vld [vmem:[#allocation17 + $0x30] sm:$0xff] }
 0x5b6   : > { %v1342_v33 = vadd.f32 %v1341_v32, %v1340_v30  ;;  %v2410_v30 = vor.u32 %v2663_v25, %v2407_v27  ;;  %v2414_v32 = vor.u32 %v2666_v29, %v2413_v28  ;;  %v1333_v29 = vld [vmem:[#allocation14] sm:$0xff] }
 0x5b8   : > { %v1343_v34 = vmul.f32 %v1342_v33, %v3548_v21  ;;  %v2664_v33 = vld [vmem:[#allocation16 + $0x6c] sm:$0xf]  ;;  %1590 = vmatpush.bf16.msra.mxu0 %v2410_v30  ;;  %1603 = vmatpush.bf16.msra.mxu1 %v2414_v32 }
 0x5b9   : > { %1579 = vmatpush.bf16.msrb.mxu3 %v2374_v55  ;;  %v1406_v55 = vperm.slane %v1403_v52, 1 }
 0x5ba   : > { %v3675_v35 = vsub.f32 %v3669_v22, %v1343_v34  ;;  %v2415_v34 = vld [vmem:[#allocation16 + $0x78] sm:$0xf0] }
 0x5bc   : > { %v1345_v0 = vmul.f32 %v3675_v35, %v3675_v35  ;;  %1591 = vmatpush.bf16.msra.mxu0 %v2394_v45  ;;  %1604 = vmatpush.bf16.msra.mxu1 %v2398_v46  ;;  %v2712_v45 = vld [vmem:[#allocation17 + $0xe8] sm:$0xff]  ;;  %v2694_v46 = vld [vmem:[#allocation17 + $0x58] sm:$0xff] }
 0x5bd   : > { %1580 = vmatpush.bf16.msrb.mxu3 %v2358_v24  ;;  %v1405_v24 = vperm.slane %v1403_v52, 0 }
 0x5be   : > { %1346 = vadd.xlane.f32.xlu2 %v1345_v0  ;;  %v2418_v0 = vor.u32 %v2664_v33, %v2415_v34  ;;  %v2706_v34 = vld [vmem:[#allocation17 + $0xb8] sm:$0xff] }
 0x5c0   : > { %1616 = vmatpush.bf16.msra.mxu2 %v2418_v0  ;;  %1592 = vmatpush.bf16.msra.mxu0 %v2378_v56  ;;  %v2697_v0 = vld [vmem:[#allocation17 + $0x70] sm:$0xff]  ;;  %v2692_v56 = vld [vmem:[#allocation17 + $0x48] sm:$0xff] }
 0x5c1   : > { %1605 = vmatpush.bf16.msra.mxu1 %v2382_v13  ;;  %1969 = vmatpush.bf16.msra.mxu3 %v2690_v37  ;;  %v2685_v13 = vld [vmem:[#allocation17 + $0x10] sm:$0xff] }
 0x5c4   : > { %1617 = vmatpush.bf16.msra.mxu2 %v2402_v50  ;;  %1593 = vmatpush.bf16.msra.mxu0 %v2362_v5  ;;  %v2693_v50 = vld [vmem:[#allocation17 + $0x50] sm:$0xff] }
 0x5c5   : > { %1606 = vmatpush.bf16.msra.mxu1 %v2366_v2  ;;  %1970 = vmatpush.bf16.msra.mxu3 %v2689_v41 }
 0x5c9   : > { %1995 = vmatpush.bf16.msrb.mxu1 %v2706_v34 }
 0x5cd   : > { %1996 = vmatpush.bf16.msrb.mxu1 %v2705_v36 }
 0x631   : > { %v1347_v39 = vpop.xlane.xlu2 %1346 }
 0x632   : > { %v1348_v44 = vmul.f32 %v1347_v39, %v3545_v10  ;;  %v2656_v10 = vld [vmem:[#allocation16 + $0x2c] sm:$0xf] }
 0x633   : > { %v2386_v62 = vor.u32 %v2656_v10, %v2383_v59  ;;  %v2704_v39 = vld [vmem:[#allocation17 + $0xa8] sm:$0xff]  ;;  %v2709_v10 = vld [vmem:[#allocation17 + $0xd0] sm:$0xff] }
 0x634   : > { %v1349_v54 = vrot.slane %v1348_v44, 4  ;;  %1997 = vmatpush.bf16.msrb.mxu1 %v2704_v39 }
 0x635   : > { %1618 = vmatpush.bf16.msra.mxu2 %v2386_v62  ;;  %v2691_v62 = vld [vmem:[#allocation17 + $0x40] sm:$0xff] }
 0x636   : > { %v1350_v31 = vadd.f32 %v1349_v54, %v1348_v44  ;;  %v2688_v44 = vld [vmem:[#allocation17 + $0x28] sm:$0xff]  ;;  %v2710_v54 = vld [vmem:[#allocation17 + $0xd8] sm:$0xff] }
 0x637   : > { %1971 = vmatpush.bf16.msra.mxu3 %v2688_v44 }
 0x638   : > { %v1351_v7 = vrot.slane %v1350_v31, 2  ;;  %1998 = vmatpush.bf16.msrb.mxu1 %v2703_v40 }
 0x639   : > { %1619 = vmatpush.bf16.msra.mxu2 %v2370_v11  ;;  %v2683_v11 = vld [vmem:[#allocation17] sm:$0xff] }
 0x63a   : > { %v1352_v12 = vadd.f32 %v1351_v7, %v1350_v31  ;;  %v1408_v7 = vperm.slane %v1403_v52, 3 }
 0x63b   : > { %1972 = vmatpush.bf16.msra.mxu3 %v2687_v48 }
 0x63c   : > { %v1353_v14 = vrot.slane %v1352_v12, 1  ;;  %1999 = vmatpush.bf16.msrb.mxu1 %v2702_v47 }
 0x63d   : > { %2008 = vmatpush.bf16.msrb.mxu2 %v2714_v38 }
 0x63e   : > { %v1354_v9 = vadd.f32 %v1353_v14, %v1352_v12  ;;  %v2707_v12 = vld [vmem:[#allocation17 + $0xc0] sm:$0xff] }
 0x63f   : > { %1973 = vmatpush.bf16.msra.mxu3 %v2686_v53 }
 0x640   : > { %v1355_v15 = vmul.f32 %v1354_v9, %v3548_v21  ;;  %v2698_v21 = vld [vmem:[#allocation17 + $0x78] sm:$0xff]  ;;  %2000 = vmatpush.bf16.msrb.mxu1 %v2701_v51 }
 0x641   : > { %1982 = vmatpush.bf16.msrb.mxu0 %v2698_v21  ;;  %2009 = vmatpush.bf16.msrb.mxu2 %v2713_v42 }
 0x642   : > { %v1356_v16 = vadd.f32 1e-05, %v1355_v15 }
 0x643   : > { %1974 = vmatpush.bf16.msra.mxu3 %v2685_v13 }
 0x644   : > { %2879 = vrsqrt.f32 %v1356_v16  ;;  %vm1363_vm10 = vweird.f32 %v1356_v16  ;;  %2001 = vmatpush.bf16.msrb.mxu1 %v2700_v57 }
 0x645   : > { %1983 = vmatpush.bf16.msrb.mxu0 %v2697_v0  ;;  %2010 = vmatpush.bf16.msrb.mxu2 %v2712_v45 }
 0x647   : > { %1975 = vmatpush.bf16.msra.mxu3 %v2684_v4 }
 0x648   : > { %2002 = vmatpush.bf16.msrb.mxu1 %v2699_v63 }
 0x649   : > { %2011 = vmatpush.bf16.msrb.mxu2 %v2711_v49 }
 0x64a   : > { %v2880_v17 = vpop.eup %2879 }
 0x64b   : > { %v1358_v18 = vmul.f32 %v2880_v17, %v1356_v16  ;;  %vm1364_vm9 = vweird.f32 %v2880_v17  ;;  %1976 = vmatpush.bf16.msra.mxu3 %v2683_v11 }
 0x64c   : > { %vm1365_vm11 = vmor %vm1363_vm10, %vm1364_vm9 }
 0x64d   : > { %v1359_v19 = vmul.f32 %v2880_v17, %v1358_v18  ;;  %2012 = vmatpush.bf16.msrb.mxu2 %v2710_v54 }
 0x64f   : > { %v1360_v20 = vmul.f32 0.5, %v1359_v19 }
 0x651   : > { %v1361_v23 = vsub.f32 1.5, %v1360_v20  ;;  %2013 = vmatpush.bf16.msrb.mxu2 %v2709_v10 }
 0x653   : > { %v1362_v25 = vmul.f32 %v2880_v17, %v1361_v23 }
 0x655   : > { %v1366_v27 = vsel %vm1365_vm11, %v2880_v17, %v1362_v25  ;;  %2014 = vmatpush.bf16.msrb.mxu2 %v2708_v6 }
 0x656   : > { %v1367_v28 = vmul.f32 %v1366_v27, %v3675_v35  ;;  %v2696_v35 = vld [vmem:[#allocation17 + $0x68] sm:$0xff] }
 0x657   : > { %1984 = vmatpush.bf16.msrb.mxu0 %v2696_v35 }
 0x658   : > { %v1368_v30 = vmul.f32 %v1367_v28, %v1332_v26 }
 0x659   : > { %2015 = vmatpush.bf16.msrb.mxu2 %v2707_v12 }
 0x65a   : > { %v1369_v32 = vadd.f32 %v1368_v30, %v1333_v29 }
 0x65b   : > { %1985 = vmatpush.bf16.msrb.mxu0 %v2695_v43 }
 0x65c   : > { %v1370_v33 = vpack.c.bf16 %v1369_v32, %v1369_v32 }
 0x65e   : > { %1581 = vmatmul.bf16.vlgmr.msrb.gmra.mxu3 %v1370_v33  ;;  %1594 = vmatmul.bf16.vlgmr.msra.gmra.mxu0 %v1370_v33 }
 0x65f   : > { %1607 = vmatmul.bf16.vlgmr.msra.gmra.mxu1 %v1370_v33  ;;  %1620 = vmatmul.bf16.vlgmr.msra.gmra.mxu2 %v1370_v33 }
 0x660   : > { %1986 = vmatpush.bf16.msrb.mxu0 %v2694_v46 }
 0x664   : > { %1987 = vmatpush.bf16.msrb.mxu0 %v2693_v50 }
 0x668   : > { %1988 = vmatpush.bf16.msrb.mxu0 %v2692_v56 }
 0x66c   : > { %1989 = vmatpush.bf16.msrb.mxu0 %v2691_v62 }
 0x6db   : > { %v1595_v59 = vpop.f32.mrf.mxu0 }
 0x6dc   : > { %v3685_v60 = vadd.f32 %v1595_v59, %v1406_v55  ;;  %v1608_v31 = vpop.f32.mrf.mxu1 }
 0x6dd   : > { %v3687_v1 = vadd.f32 %v1608_v31, %v1407_v58 }
 0x6de   : > { %v2484_v3 = vmul.f32 -1.442695, %v3685_v60 }
 0x6df   : > { %v2485_v61 = vmul.f32 -1.442695, %v3687_v1 }
 0x6e0   : > { %2881 = vpow2.f32 %v2484_v3 }
 0x6e1   : > { %2883 = vpow2.f32 %v2485_v61  ;;  %v1582_v5 = vpop.f32.mrf.mxu3 }
 0x6e2   : > { %v3691_v2 = vadd.f32 %v1582_v5, %v1405_v24  ;;  %v1621_v8 = vpop.f32.mrf.mxu2 }
 0x6e3   : > { %v3693_v14 = vadd.f32 %v1621_v8, %v1408_v7  ;;  %v1597_v9 = vpop.f32.mrf.mxu0 }
 0x6e4   : > { %v2483_v15 = vmul.f32 -1.442695, %v3691_v2  ;;  %v1610_v16 = vpop.f32.mrf.mxu1 }
 0x6e5   : > { %v2486_v17 = vmul.f32 -1.442695, %v3693_v14 }
 0x6e6   : > { %v2882_v18 = vpop.eup %2881  ;;  %2885 = vpow2.f32 %v2483_v15 }
 0x6e7   : > { %v2884_v19 = vpop.eup %2883  ;;  %v1638_v20 = vadd.f32 1.0, %v2882_v18  ;;  %2887 = vpow2.f32 %v2486_v17 }
 0x6e8   : > { %v1639_v23 = vadd.f32 1.0, %v2884_v19  ;;  %v2864_v19 = vld [vmem:[%s3780_s13] ss:$0 sm:$0xff] }
 0x6e9   : > { %2889 = vrcp.f32 %v1638_v20  ;;  %v1584_v25 = vpop.f32.mrf.mxu3  ;;  %v1665_v36 = vand.u32 2147483647, %v1638_v20  ;;  %v1667_v37 = vand.u32 2147483648, %v1638_v20  ;;  %vm1661_vm13 = vweird.f32 %v1638_v20 }
 0x6ea   : > { %2891 = vrcp.f32 %v1639_v23  ;;  %v1623_v26 = vpop.f32.mrf.mxu2  ;;  %v1680_v35 = vand.u32 2147483647, %v1639_v23  ;;  %v1682_v39 = vand.u32 2147483648, %v1639_v23  ;;  %vm1676_vm14 = vweird.f32 %v1639_v23 }
 0x6eb   : > { %vm1666_vm0 = vcmp.eq.f32.partialorder %v1665_v36, 8.507059e+37  ;;  %v1668_v45 = vor.u32 1.1754944e-38, %v1667_v37 }
 0x6ec   : > { %v2886_v27 = vpop.eup %2885  ;;  %vm1681_vm2 = vcmp.eq.f32.partialorder %v1680_v35, 8.507059e+37  ;;  %v1683_v48 = vor.u32 1.1754944e-38, %v1682_v39 }
 0x6ed   : > { %v2888_v28 = vpop.eup %2887  ;;  %v1637_v29 = vadd.f32 1.0, %v2886_v27 }
 0x6ee   : > { %v3697_v30 = vadd.f32 1.0, %v2888_v28 }
 0x6ef   : > { %v2890_v32 = vpop.eup %2889  ;;  %2893 = vrcp.f32 %v1637_v29  ;;  %v1650_v52 = vand.u32 2147483647, %v1637_v29  ;;  %v1652_v53 = vand.u32 2147483648, %v1637_v29  ;;  %vm1646_vm6 = vweird.f32 %v1637_v29 }
 0x6f0   : > { %v2892_v33 = vpop.eup %2891  ;;  %v1657_v21 = vmul.f32 %v2890_v32, %v1638_v20  ;;  %2895 = vrcp.f32 %v3697_v30  ;;  %vm1662_vm12 = vweird.f32 %v2890_v32  ;;  %v1697_v57 = vand.u32 2147483648, %v3697_v30 }
 0x6f1   : > { %v1672_v34 = vmul.f32 %v2892_v33, %v1639_v23  ;;  %vm1677_vm15 = vweird.f32 %v2892_v33  ;;  %vm1663_vm1 = vmor %vm1661_vm13, %vm1662_vm12  ;;  %v1695_v62 = vand.u32 2147483647, %v3697_v30  ;;  %v1653_v4 = vor.u32 1.1754944e-38, %v1652_v53 }
 0x6f2   : > { %v1658_v0 = vsub.f32 1.0, %v1657_v21  ;;  %vm1678_vm3 = vmor %vm1676_vm14, %vm1677_vm15  ;;  %vm1691_vm8 = vweird.f32 %v3697_v30  ;;  %vm1651_vm9 = vcmp.eq.f32.partialorder %v1650_v52, 8.507059e+37 }
 0x6f3   : > { %v1673_v38 = vsub.f32 1.0, %v1672_v34  ;;  %vm1696_vm11 = vcmp.eq.f32.partialorder %v1695_v62, 8.507059e+37 }
 0x6f4   : > { %v1659_v41 = vmul.f32 %v2890_v32, %v1658_v0 }
 0x6f5   : > { %v2894_v42 = vpop.eup %2893  ;;  %v1674_v43 = vmul.f32 %v2892_v33, %v1673_v38 }
 0x6f6   : > { %v2896_v40 = vpop.eup %2895  ;;  %v1660_v44 = vadd.f32 %v2890_v32, %v1659_v41  ;;  %v1642_v46 = vmul.f32 %v2894_v42, %v1637_v29  ;;  %vm1647_vm4 = vweird.f32 %v2894_v42 }
 0x6f7   : > { %v1675_v47 = vadd.f32 %v2892_v33, %v1674_v43  ;;  %v1687_v49 = vmul.f32 %v2896_v40, %v3697_v30  ;;  %vm1692_vm5 = vweird.f32 %v2896_v40  ;;  %vm1648_vm7 = vmor %vm1646_vm6, %vm1647_vm4 }
 0x6f8   : > { %v1664_v50 = vsel %vm1663_vm1, %v2890_v32, %v1660_v44  ;;  %v1643_v51 = vsub.f32 1.0, %v1642_v46  ;;  %vm1693_vm10 = vmor %vm1691_vm8, %vm1692_vm5 }
 0x6f9   : > { %v1669_v54 = vsel %vm1666_vm0, %v1668_v45, %v1664_v50  ;;  %v1679_v55 = vsel %vm1678_vm3, %v2892_v33, %v1675_v47  ;;  %v1688_v56 = vsub.f32 1.0, %v1687_v49 }
 0x6fa   : > { %v1702_v58 = vmul.f32 %v1669_v54, %v3685_v60  ;;  %v1684_v13 = vsel %vm1681_vm2, %v1683_v48, %v1679_v55  ;;  %v1644_v10 = vmul.f32 %v2894_v42, %v1643_v51  ;;  %v1698_v60 = vor.u32 1.1754944e-38, %v1697_v57 }
 0x6fb   : > { %v1703_v59 = vmul.f32 %v1684_v13, %v3687_v1  ;;  %v1689_v31 = vmul.f32 %v2896_v40, %v1688_v56 }
 0x6fc   : > { %v1706_v63 = vpack.c.bf16 %v1702_v58, %v1702_v58  ;;  %v1645_v3 = vadd.f32 %v2894_v42, %v1644_v10 }
 0x6fd   : > { %v1707_v24 = vpack.c.bf16 %v1703_v59, %v1703_v59  ;;  %v1690_v6 = vadd.f32 %v2896_v40, %v1689_v31 }
 0x6fe   : > { %v1649_v61 = vsel %vm1648_vm7, %v2894_v42, %v1645_v3  ;;  %1990 = vmatmul.bf16.vlgmr.msrb.gmra.mxu0 %v1706_v63 }
 0x6ff   : > { %v1654_v7 = vsel %vm1651_vm9, %v1653_v4, %v1649_v61  ;;  %v1694_v1 = vsel %vm1693_vm10, %v2896_v40, %v1690_v6  ;;  %2003 = vmatmul.bf16.vlgmr.msrb.gmra.mxu1 %v1707_v24 }
 0x700   : > { %v1701_v5 = vmul.f32 %v1654_v7, %v3691_v2  ;;  %v1699_v8 = vsel %vm1696_vm11, %v1698_v60, %v1694_v1 }
 0x701   : > { %v1704_v11 = vmul.f32 %v1699_v8, %v3693_v14 }
 0x702   : > { %v1705_v12 = vpack.c.bf16 %v1701_v5, %v1701_v5 }
 0x703   : > { %v1708_v9 = vpack.c.bf16 %v1704_v11, %v1704_v11 }
 0x704   : > { %1977 = vmatmul.bf16.vlgmr.msra.gmra.mxu3 %v1705_v12 }
 0x705   : > { %2016 = vmatmul.bf16.vlgmr.msrb.gmra.mxu2 %v1708_v9 }
 0x77b   : > { %v1991_v15 = vpop.f32.mrf.mxu0 }
 0x77c   : > { %v2004_v16 = vpop.f32.mrf.mxu1 }
 0x783   : > { %v1993_v17 = vpop.f32.mrf.mxu0 }
 0x784   : > { %v2006_v18 = vpop.f32.mrf.mxu1 }
 0x787   : > { %v1978_v20 = vpop.f32.mrf.mxu3 }
 0x788   : > { %v1979_v2 = vadd.f32 %v2864_v19, %v1978_v20  ;;  %v2017_v23 = vpop.f32.mrf.mxu2 }
 0x78a   : > { %v1992_v25 = vadd.f32 %v1991_v15, %v1979_v2 }
 0x78c   : > { %v2005_v14 = vadd.f32 %v2004_v16, %v1992_v25 }
 0x78e   : > { %v2018_v26 = vadd.f32 %v2017_v23, %v2005_v14 }
 0x78f   : > { %v1980_v27 = vpop.f32.mrf.mxu3 }
 0x790   : > { %v2021_v28 = vadd.f32 %v2018_v26, %v3669_v22  ;;  %v2019_v29 = vpop.f32.mrf.mxu2 }
 0x792   : > { %2022 = vst [vmem:[%s596_s16] sm:$0xff] %v2021_v28 }
 0x793   : > { %3224 = shalt.err (!%p3221_p9)
}
 0x794   : > { %2753 = dma.vmem_to_hbm [thread:$0]  (%p3481_p13), %s2037_s22, 128, %s2039_s14, %s2024_s15  }
 0x795 PF: > { %s2050_s19 = sand.u32 1, %s3271_s25   ;;  %p3782_p10 = scmp.ge.s32.totalorder %s3283_s28, 2 }
 0x796   : > { %s2051_s23 = scalar_lea.sflag [#allocation4], %s2050_s19 }
 0x797   : > { %p2788_p11 = pnand %p3782_p10, %p3486_p5 }
 0x799   : > { %p2789_p0 = pneg %p2788_p11 }
 0x79b   : > { %3266 = dma.done.wait (%p2789_p0), %s2051_s23, 128  }
 0x79c   : > { %3268 = vsyncadd (%p2789_p0), %s2051_s23, 4294967168  ;;  %p31_p2 = scmp.ge.s32.totalorder %s3461_s1, 4   ;;  %s3783_s25 = smov %s3275_s26 }
 0x79d   : > { %s3784_s26 = smov %s3279_s27  ;;  %s3785_s27 = smov %s3473_s30 }
 0x79e   : > { %s3786_s28 = smov %s3461_s1  ;;  %33 = sbr.rel (!%p31_p2) target bundleno = 18 (0x12), region = 154 }
 0x7a3   :  { %2057 = vsyncpa [#allocation3], 1 }
 0x7a4   :  { %2059 = vsyncpa [#allocation3 + $0x1], 1 }
 0x7a5   :  { %2060 = vsyncpa [#allocation6], 1 }
 0x7a6   :  { %2061 = vsyncpa [#allocation9], 1 }
 0x7a7   :  { %2062 = vsyncpa [#allocation12], 1 }
 0x7a8   :  { %2063 = vsyncpa [#allocation15], 1 }
 0x7a9   :  { %2064 = vsyncpa [#allocation18], 1 }
 0x7aa   :  { %2065 = vsyncpa [#allocation4], 1 }
 0x7ab   :  { %2067 = vsyncpa [#allocation4 + $0x1], 1 }

</bundles_post_ra>
